<compile_context>
chip_gen: v6e
topology: v6e:2x2x1
jax: 0.10.0
libtpu: 0.0.40
codegen_flags: <defaults>
</compile_context>

<pallas_src>
import functools

import jax
import jax.numpy as jnp
from jax import lax
from jax.experimental import pallas as pl
from jax.experimental.pallas import tpu as pltpu

F32 = jnp.float32
BF16 = jnp.bfloat16
PROTO_EPS = 1e-4      # ProtoNets.epsilon
BN_EPS = 1e-5         # BatchNorm eps


# ----------------------- backbone-stub pointwise kernel ----------------------

def _pointwise_kernel(x_ref, w_ref, b_ref, o_ref):
    """relu((tm, C_in) @ (C_in, C_out) + bias) — BN scale pre-folded into w."""
    y = jnp.dot(x_ref[...], w_ref[...], preferred_element_type=jnp.float32)
    o_ref[...] = jnp.maximum(y + b_ref[...], 0.0).astype(o_ref.dtype)


def pointwise_bn_relu(x2d, w_t, b, out_dtype=jnp.float32):
    """x2d: (M, C_in) bf16, w_t: (C_in, C_out) bf16, b: (1, C_out) f32."""
    M, C_in = x2d.shape
    C_out = w_t.shape[1]
    tm = M
    for cand in (512, 256, 128, 64, 32, 16, 8):
        if M % cand == 0:
            tm = cand
            break
    return pl.pallas_call(
        _pointwise_kernel,
        out_shape=jax.ShapeDtypeStruct((M, C_out), out_dtype),
        grid_spec=pltpu.PrefetchScalarGridSpec(
            num_scalar_prefetch=0,
            grid=(M // tm,),
            in_specs=[
                pl.BlockSpec((tm, C_in), lambda i: (i, 0)),
                pl.BlockSpec((C_in, C_out), lambda i: (0, 0)),
                pl.BlockSpec((1, C_out), lambda i: (0, 0)),
            ],
            out_specs=pl.BlockSpec((tm, C_out), lambda i: (i, 0)),
        ),
        compiler_params=pltpu.CompilerParams(
            dimension_semantics=("parallel",)),
    )(x2d, w_t, b)


# ------------- fused layer2-stub + add_ons + p_map + head kernel -------------

def _fused_kernel(h1s_ref, avg_ref, mx_ref,
                  l2_w, l2_b,
                  ao_w1, ao_b1, ao_w2, ao_b2,
                  pm_w1a, pm_w1m, pm_w1h, pm_b1,
                  pm_w2, pm_b2, protos_u, w_last,
                  o_ref, *, inv_p_size):
    """One batch sample: layer2 stub, features_add_ons, p_map (p_mode>=2 path),
    cosine prototype distances, distance_2_similarity, last_layer."""
    h1s = h1s_ref[0]                                          # (S, 256) bf16

    # ---- layer2 stub: pointwise conv -> folded BN -> ReLU (h2 stays in VMEM)
    h2f = jnp.dot(h1s, l2_w[...], preferred_element_type=jnp.float32)
    h2f = jnp.maximum(h2f + l2_b[...], 0.0)                   # (S, 512) f32
    h2 = h2f.astype(BF16)

    # ---- features_add_ons: conv1x1 -> BN -> ReLU -> conv1x1 -> BN -> Sigmoid
    a1 = jnp.dot(h2, ao_w1[...], preferred_element_type=jnp.float32)
    a1 = jnp.maximum(a1 + ao_b1[...], 0.0)                    # (S, 128) f32
    a2 = jnp.dot(a1.astype(BF16), ao_w2[...], preferred_element_type=jnp.float32)
    f_x = jax.nn.sigmoid(a2 + ao_b2[...])                     # (S, 128) f32

    # ---- p_map first conv: 3 partial matmuls == conv on concat([avg,max,h2])
    p1 = jnp.dot(avg_ref[0], pm_w1a[...], preferred_element_type=jnp.float32)
    p1 = p1 + jnp.dot(mx_ref[0], pm_w1m[...], preferred_element_type=jnp.float32)
    p1 = p1 + jnp.dot(h2, pm_w1h[...], preferred_element_type=jnp.float32)
    p1 = jnp.maximum(p1 + pm_b1[...], 0.0)                    # (S, 128)
    p2 = jnp.dot(p1.astype(BF16), pm_w2[...], preferred_element_type=jnp.float32)
    p2 = jnp.maximum(p2 + pm_b2[...], 0.0)                    # (S, P)

    # get_p_map (p_mode >= 2): min-max scale over (P, spatial) per sample,
    # then steep sigmoid(omega*(x - sigma)) with omega=10, sigma=0.5
    p2 = p2 - jnp.min(p2, keepdims=True)
    mx_val = jnp.maximum(jnp.max(p2, keepdims=True), PROTO_EPS)   # (1, 1)
    p2 = p2 * pl.reciprocal(mx_val, approx=True)
    p_map = jax.nn.sigmoid(10.0 * (p2 - 0.5))                 # (S, P)

    # ---- prototype_distances (p_mode>=1, cos):
    # p_x[p,c] = einsum('phwa,chwa->pc', p_map, f_x) / p_size
    p_x = lax.dot_general(p_map, f_x, (((0,), (0,)), ((), ())),
                          preferred_element_type=jnp.float32) * inv_p_size  # (P, C)
    pv = protos_u[...]                                        # (P, C), pre-normalized
    num = jnp.sum(p_x * pv, axis=1, keepdims=True)            # (P, 1)
    nrm = jnp.sqrt(jnp.sum(p_x * p_x, axis=1, keepdims=True))
    cos = num / jnp.maximum(nrm, 1e-12)
    # distances = relu(1 - cos); similarity = relu(1 - distances) = relu(cos)
    sim = jnp.maximum(cos, 0.0)                               # (P, 1)

    # ---- last_layer (no bias)
    logits = jnp.dot(w_last[...], sim, preferred_element_type=jnp.float32)  # (NC,1)
    o_ref[0] = logits.astype(o_ref.dtype)


def fused_layer2_addons_pmap_head(h1s, avg, mx, p):
    """h1s/avg/mx: (B,S,256) bf16 -> logits (B, NC) f32."""
    B, S, C1 = h1s.shape
    C2 = p["l2_w"].shape[1]
    P, C = p["protos_u"].shape
    NC = p["w_last"].shape[0]
    # TODO(synk): for very large volumes on v7x (64 MiB VMEM), add an S-tiling
    # grid axis with accumulator scratch for the min/max + head reductions.
    out = pl.pallas_call(
        functools.partial(_fused_kernel, inv_p_size=1.0 / float(S)),
        out_shape=jax.ShapeDtypeStruct((B, NC, 1), jnp.float32),
        grid_spec=pltpu.PrefetchScalarGridSpec(
            num_scalar_prefetch=0,
            grid=(B,),
            in_specs=[
                pl.BlockSpec((1, S, C1), lambda b: (b, 0, 0)),   # h1s
                pl.BlockSpec((1, S, C1), lambda b: (b, 0, 0)),   # avg
                pl.BlockSpec((1, S, C1), lambda b: (b, 0, 0)),   # max
                pl.BlockSpec((C1, C2), lambda b: (0, 0)),        # l2_w
                pl.BlockSpec((1, C2), lambda b: (0, 0)),         # l2_b
                pl.BlockSpec((C2, C), lambda b: (0, 0)),         # ao_w1
                pl.BlockSpec((1, C), lambda b: (0, 0)),          # ao_b1
                pl.BlockSpec((C, C), lambda b: (0, 0)),          # ao_w2
                pl.BlockSpec((1, C), lambda b: (0, 0)),          # ao_b2
                pl.BlockSpec((C1, C), lambda b: (0, 0)),         # pm_w1a
                pl.BlockSpec((C1, C), lambda b: (0, 0)),         # pm_w1m
                pl.BlockSpec((C2, C), lambda b: (0, 0)),         # pm_w1h
                pl.BlockSpec((1, C), lambda b: (0, 0)),          # pm_b1
                pl.BlockSpec((C, P), lambda b: (0, 0)),          # pm_w2
                pl.BlockSpec((1, P), lambda b: (0, 0)),          # pm_b2
                pl.BlockSpec((P, C), lambda b: (0, 0)),          # protos_u
                pl.BlockSpec((NC, P), lambda b: (0, 0)),         # w_last
            ],
            out_specs=pl.BlockSpec((1, NC, 1), lambda b: (b, 0, 0)),
        ),
        compiler_params=pltpu.CompilerParams(
            dimension_semantics=("parallel",),
            vmem_limit_bytes=48 * 1024 * 1024,
        ),
    )(h1s, avg, mx,
      p["l2_w"], p["l2_b"],
      p["ao_w1"], p["ao_b1"], p["ao_w2"], p["ao_b2"],
      p["pm_w1a"], p["pm_w1m"], p["pm_w1h"], p["pm_b1"],
      p["pm_w2"], p["pm_b2"], p["protos_u"], p["w_last"])
    return out[..., 0]                                         # (B, NC)


# ----------------------------- parameters -----------------------------------

def _kaiming(key, shape, fan_out):
    # kaiming_normal_(mode='fan_out', nonlinearity='relu'): std = sqrt(2/fan_out)
    return jax.random.normal(key, shape, F32) * jnp.sqrt(2.0 / fan_out)


def make_params(key, in_channels=4, num_prototypes=30, proto_dim=128, num_classes=2):
    ks = jax.random.split(key, 8)
    # fresh BatchNorm3d in eval mode: gamma=1, beta=0, mean=0, var=1
    bn_s = 1.0 / jnp.sqrt(jnp.float32(1.0 + BN_EPS))

    def fold_t(w_oi):
        """(C_out, C_in) conv weight -> BN-folded, transposed (C_in,C_out) bf16
        plus f32 bias row (zero for a freshly-initialized BN)."""
        w = (w_oi * bn_s).T.astype(BF16)
        b = jnp.zeros((1, w_oi.shape[0]), F32)
        return w, b

    p = {}
    # --- backbone stub (see TODO in forward): conv1 7x7x7/s2 -> 64, l1 -> 256, l2 -> 512
    p["conv1_w"] = _kaiming(ks[0], (7, 7, 7, in_channels, 64), 64 * 7 * 7 * 7) * bn_s
    p["l1_w"], p["l1_b"] = fold_t(_kaiming(ks[1], (256, 64), 256))
    p["l2_w"], p["l2_b"] = fold_t(_kaiming(ks[2], (512, 256), 512))
    # --- features_add_ons: Conv3d(512,128,1) BN ReLU Conv3d(128,128,1) BN Sigmoid
    p["ao_w1"], p["ao_b1"] = fold_t(_kaiming(ks[3], (proto_dim, 512), proto_dim))
    p["ao_w2"], p["ao_b2"] = fold_t(_kaiming(ks[4], (proto_dim, proto_dim), proto_dim))
    # --- p_map: Conv3d(1024,128,1) BN ReLU Conv3d(128,30,1) BN (+ p_mode>=2 head)
    # input channel order of the fused tensor is [avg(256) | max(256) | h2(512)]
    pm_w1 = _kaiming(ks[5], (proto_dim, 1024), proto_dim)
    p["pm_w1a"] = (pm_w1[:, 0:256] * bn_s).T.astype(BF16)
    p["pm_w1m"] = (pm_w1[:, 256:512] * bn_s).T.astype(BF16)
    p["pm_w1h"] = (pm_w1[:, 512:1024] * bn_s).T.astype(BF16)
    p["pm_b1"] = jnp.zeros((1, proto_dim), F32)
    p["pm_w2"], p["pm_b2"] = fold_t(_kaiming(ks[6], (num_prototypes, proto_dim),
                                             num_prototypes))
    # --- prototype_vectors ~ U[0,1), (30,128,1,1,1) flattened; pre-normalized (dim=1)
    protos = jax.random.uniform(ks[7], (num_prototypes, proto_dim), F32)
    nrm = jnp.sqrt(jnp.sum(protos * protos, axis=1, keepdims=True))
    p["protos_u"] = protos / jnp.maximum(nrm, 1e-12)
    # --- last_layer after set_last_layer_incorrect_connection(-0.5)
    per_class = num_prototypes // num_classes
    ident = ((jnp.arange(num_prototypes) // per_class)[None, :]
             == jnp.arange(num_classes)[:, None])
    p["w_last"] = jnp.where(ident, 1.0, -0.5).astype(F32)      # (NC, P)
    return p


# ----------------------------- forward pass ---------------------------------

def proto_nets_forward(x, params):
    """ProtoNets.forward in eval mode -> logits (B, num_classes). x is NCDHW."""
    # ---- backbone (multiscale features h) ----
    # TODO(synk): the real backbone is resnet_imagenet('resnet152_quad')
    # (ResidualNet + QuadrupletAttention, not provided); substituted a
    # deterministic stub with the same multiscale channel widths (64/256/512)
    # and stride pattern (1/2, 1/4, 1/8). Stub runs channels-last (NDHWC).
    xc = jnp.transpose(x, (0, 2, 3, 4, 1))                     # (B, D, H, W, C)
    h0 = lax.conv_general_dilated(
        xc, params["conv1_w"], window_strides=(2, 2, 2), padding=[(3, 3)] * 3,
        dimension_numbers=("NDHWC", "DHWIO", "NDHWC"))
    h0 = jnp.maximum(h0, 0.0)                                  # BN folded into conv1_w
    B = h0.shape[0]

    # layer1 stub: 1/4 res, 256 ch  (batch*spatial folded into matmul M axis)
    h0s = h0[:, ::2, ::2, ::2, :]
    d1 = h0s.shape[1:4]
    h1 = pointwise_bn_relu(h0s.reshape(-1, h0s.shape[-1]).astype(BF16),
                           params["l1_w"], params["l1_b"])
    h1 = h1.reshape((B,) + d1 + (h1.shape[-1],))               # (B, d,h,w, 256) f32

    # ---- down_and_fuse: PoolingGate(downsample=2) on h1; concat ('c') is NOT
    # materialized — avg/max/h2 feed the fused kernel separately (h2 is computed
    # in-kernel from the stride-2 subsample of h1).
    # TODO(synk): AvgPool3d/MaxPool3d (k=3, s=2, p=1, count_include_pad) in plain JAX.
    win, strd = (1, 3, 3, 3, 1), (1, 2, 2, 2, 1)
    pads = [(0, 0), (1, 1), (1, 1), (1, 1), (0, 0)]
    avg = lax.reduce_window(h1, 0.0, lax.add, win, strd, pads) / 27.0
    mxp = lax.reduce_window(h1, -jnp.inf, lax.max, win, strd, pads)

    # layer2 stub input: 1/8 res subsample of h1 (layer2 matmul is fused in-kernel)
    h1s = h1[:, ::2, ::2, ::2, :]
    d2 = h1s.shape[1:4]
    S = d2[0] * d2[1] * d2[2]
    h1sf = h1s.reshape(B, S, -1).astype(BF16)
    avgf = avg.reshape(B, S, -1).astype(BF16)
    mxf = mxp.reshape(B, S, -1).astype(BF16)

    # ---- fused: layer2 + features_add_ons + p_map + cosine head + last_layer
    logits = fused_layer2_addons_pmap_head(h1sf, avgf, mxf, params)
    return logits                                              # (B, 2)


if __name__ == "__main__":
    key = jax.random.PRNGKey(0)
    pkey, xkey = jax.random.split(key)
    params = make_params(pkey, in_channels=4)
    # small shapes consistent with in_size=(4, D, H, W): batch=2, 4 channels, 16^3 volume
    x = jax.random.normal(xkey, (2, 4, 16, 16, 16), F32)       # NCDHW
    fwd = jax.jit(proto_nets_forward)
    logits = fwd(x, params)
    jax.block_until_ready(logits)
    assert logits.shape == (2, 2), logits.shape
    print("KERNEL_OK")
</pallas_src>

<mosaic_0001>
module attributes {stable_mosaic.version = 11 : i64} {
  func.func @_pointwise_kernel(%arg0: i32, %arg1: memref<128x64xbf16, #tpu.memory_space<vmem>>, %arg2: memref<64x256xbf16, #tpu.memory_space<vmem>>, %arg3: memref<1x256xf32, #tpu.memory_space<vmem>>, %arg4: memref<128x256xf32, #tpu.memory_space<vmem>>) attributes {dimension_semantics = [#tpu.dimension_semantics<parallel>], iteration_bounds = array<i64: 1>, scalar_prefetch = 0 : i64, scratch_operands = 0 : i64, tpu.core_type = #tpu.core_type<tc>, window_params = [{transform_indices = @transform_0, window_bounds = array<i64: 128, 64>}, {pipeline_mode = #tpu.pipeline_mode<synchronous>, transform_indices = @transform_1, window_bounds = array<i64: 64, 256>}, {pipeline_mode = #tpu.pipeline_mode<synchronous>, transform_indices = @transform_2, window_bounds = array<i64: 1, 256>}, {transform_indices = @transform_3, window_bounds = array<i64: 128, 256>}]} {
    %c0 = arith.constant 0 : index
    %c0_0 = arith.constant 0 : index
    %0 = vector.load %arg1[%c0, %c0_0] : memref<128x64xbf16, #tpu.memory_space<vmem>>, vector<128x64xbf16>
    %c0_1 = arith.constant 0 : index
    %c0_2 = arith.constant 0 : index
    %1 = vector.load %arg2[%c0_1, %c0_2] : memref<64x256xbf16, #tpu.memory_space<vmem>>, vector<64x256xbf16>
    %cst = arith.constant dense<0.000000e+00> : vector<128x256xf32>
    %2 = tpu.matmul %0, %1, %cst {dimension_numbers = #tpu.dot_dimension_numbers<[1], [0], [0], [1], [0, 0, 1, 1], [], []>} : vector<128x64xbf16>, vector<64x256xbf16>, vector<128x256xf32> -> vector<128x256xf32>
    %c0_3 = arith.constant 0 : index
    %c0_4 = arith.constant 0 : index
    %3 = vector.load %arg3[%c0_3, %c0_4] : memref<1x256xf32, #tpu.memory_space<vmem>>, vector<1x256xf32>
    %4 = vector.broadcast %3 : vector<1x256xf32> to vector<128x256xf32>
    %5 = arith.addf %2, %4 : vector<128x256xf32>
    %cst_5 = arith.constant 0.000000e+00 : f32
    %6 = vector.broadcast %cst_5 : f32 to vector<128x256xf32>
    %7 = arith.maximumf %5, %6 : vector<128x256xf32>
    %c0_6 = arith.constant 0 : index
    %c0_7 = arith.constant 0 : index
    %8 = vector.load %arg4[%c0_6, %c0_7] : memref<128x256xf32, #tpu.memory_space<vmem>>, vector<128x256xf32>
    tpu.vector_store %arg4[%c0_6, %c0_7], %7 {strides = array<i32>} : memref<128x256xf32, #tpu.memory_space<vmem>>, vector<128x256xf32>,
    return
  }
  func.func @transform_0(%arg0: i32) -> (i32, i32) {
    %c0_i32 = arith.constant 0 : i32
    %c0_i32_0 = arith.constant 0 : i32
    return %arg0, %c0_i32 : i32, i32
  }
  func.func @transform_1(%arg0: i32) -> (i32, i32) {
    %c0_i32 = arith.constant 0 : i32
    %c0_i32_0 = arith.constant 0 : i32
    %c0_i32_1 = arith.constant 0 : i32
    return %c0_i32, %c0_i32_0 : i32, i32
  }
  func.func @transform_2(%arg0: i32) -> (i32, i32) {
    %c0_i32 = arith.constant 0 : i32
    %c0_i32_0 = arith.constant 0 : i32
    %c0_i32_1 = arith.constant 0 : i32
    return %c0_i32, %c0_i32_0 : i32, i32
  }
  func.func @transform_3(%arg0: i32) -> (i32, i32) {
    %c0_i32 = arith.constant 0 : i32
    %c0_i32_0 = arith.constant 0 : i32
    return %arg0, %c0_i32 : i32, i32
  }
}

module attributes {stable_mosaic.version = 11 : i64} {
  func.func @_fused_kernel(%arg0: i32, %arg1: memref<1x8x256xbf16, #tpu.memory_space<vmem>>, %arg2: memref<1x8x256xbf16, #tpu.memory_space<vmem>>, %arg3: memref<1x8x256xbf16, #tpu.memory_space<vmem>>, %arg4: memref<256x512xbf16, #tpu.memory_space<vmem>>, %arg5: memref<1x512xf32, #tpu.memory_space<vmem>>, %arg6: memref<512x128xbf16, #tpu.memory_space<vmem>>, %arg7: memref<1x128xf32, #tpu.memory_space<vmem>>, %arg8: memref<128x128xbf16, #tpu.memory_space<vmem>>, %arg9: memref<1x128xf32, #tpu.memory_space<vmem>>, %arg10: memref<256x128xbf16, #tpu.memory_space<vmem>>, %arg11: memref<256x128xbf16, #tpu.memory_space<vmem>>, %arg12: memref<512x128xbf16, #tpu.memory_space<vmem>>, %arg13: memref<1x128xf32, #tpu.memory_space<vmem>>, %arg14: memref<128x30xbf16, #tpu.memory_space<vmem>>, %arg15: memref<1x30xf32, #tpu.memory_space<vmem>>, %arg16: memref<30x128xf32, #tpu.memory_space<vmem>>, %arg17: memref<2x30xf32, #tpu.memory_space<vmem>>, %arg18: memref<1x2x1xf32, #tpu.memory_space<vmem>>) attributes {dimension_semantics = [#tpu.dimension_semantics<parallel>], iteration_bounds = array<i64: 2>, scalar_prefetch = 0 : i64, scratch_operands = 0 : i64, tpu.core_type = #tpu.core_type<tc>, window_params = [{transform_indices = @transform_0, window_bounds = array<i64: 1, 8, 256>}, {transform_indices = @transform_1, window_bounds = array<i64: 1, 8, 256>}, {transform_indices = @transform_2, window_bounds = array<i64: 1, 8, 256>}, {pipeline_mode = #tpu.pipeline_mode<synchronous>, transform_indices = @transform_3, window_bounds = array<i64: 256, 512>}, {pipeline_mode = #tpu.pipeline_mode<synchronous>, transform_indices = @transform_4, window_bounds = array<i64: 1, 512>}, {pipeline_mode = #tpu.pipeline_mode<synchronous>, transform_indices = @transform_5, window_bounds = array<i64: 512, 128>}, {pipeline_mode = #tpu.pipeline_mode<synchronous>, transform_indices = @transform_6, window_bounds = array<i64: 1, 128>}, {pipeline_mode = #tpu.pipeline_mode<synchronous>, transform_indices = @transform_7, window_bounds = array<i64: 128, 128>}, {pipeline_mode = #tpu.pipeline_mode<synchronous>, transform_indices = @transform_8, window_bounds = array<i64: 1, 128>}, {pipeline_mode = #tpu.pipeline_mode<synchronous>, transform_indices = @transform_9, window_bounds = array<i64: 256, 128>}, {pipeline_mode = #tpu.pipeline_mode<synchronous>, transform_indices = @transform_10, window_bounds = array<i64: 256, 128>}, {pipeline_mode = #tpu.pipeline_mode<synchronous>, transform_indices = @transform_11, window_bounds = array<i64: 512, 128>}, {pipeline_mode = #tpu.pipeline_mode<synchronous>, transform_indices = @transform_12, window_bounds = array<i64: 1, 128>}, {pipeline_mode = #tpu.pipeline_mode<synchronous>, transform_indices = @transform_13, window_bounds = array<i64: 128, 30>}, {pipeline_mode = #tpu.pipeline_mode<synchronous>, transform_indices = @transform_14, window_bounds = array<i64: 1, 30>}, {pipeline_mode = #tpu.pipeline_mode<synchronous>, transform_indices = @transform_15, window_bounds = array<i64: 30, 128>}, {pipeline_mode = #tpu.pipeline_mode<synchronous>, transform_indices = @transform_16, window_bounds = array<i64: 2, 30>}, {transform_indices = @transform_17, window_bounds = array<i64: 1, 2, 1>}]} {
    %c0 = arith.constant 0 : index
    %c0_0 = arith.constant 0 : index
    %c0_1 = arith.constant 0 : index
    %0 = vector.load %arg1[%c0, %c0_0, %c0_1] : memref<1x8x256xbf16, #tpu.memory_space<vmem>>, vector<1x8x256xbf16>
    %1 = vector.shape_cast %0 : vector<1x8x256xbf16> to vector<8x256xbf16>
    %c0_2 = arith.constant 0 : index
    %c0_3 = arith.constant 0 : index
    %2 = vector.load %arg4[%c0_2, %c0_3] : memref<256x512xbf16, #tpu.memory_space<vmem>>, vector<256x512xbf16>
    %cst = arith.constant dense<0.000000e+00> : vector<8x512xf32>
    %3 = tpu.matmul %1, %2, %cst {dimension_numbers = #tpu.dot_dimension_numbers<[1], [0], [0], [1], [0, 0, 1, 1], [], []>} : vector<8x256xbf16>, vector<256x512xbf16>, vector<8x512xf32> -> vector<8x512xf32>
    %c0_4 = arith.constant 0 : index
    %c0_5 = arith.constant 0 : index
    %4 = vector.load %arg5[%c0_4, %c0_5] : memref<1x512xf32, #tpu.memory_space<vmem>>, vector<1x512xf32>
    %5 = vector.broadcast %4 : vector<1x512xf32> to vector<8x512xf32>
    %6 = arith.addf %3, %5 : vector<8x512xf32>
    %cst_6 = arith.constant 0.000000e+00 : f32
    %7 = vector.broadcast %cst_6 : f32 to vector<8x512xf32>
    %8 = arith.maximumf %6, %7 : vector<8x512xf32>
    %9 = arith.truncf %8 : vector<8x512xf32> to vector<8x512xbf16>
    %c0_7 = arith.constant 0 : index
    %c0_8 = arith.constant 0 : index
    %10 = vector.load %arg6[%c0_7, %c0_8] : memref<512x128xbf16, #tpu.memory_space<vmem>>, vector<512x128xbf16>
    %cst_9 = arith.constant dense<0.000000e+00> : vector<8x128xf32>
    %11 = tpu.matmul %9, %10, %cst_9 {dimension_numbers = #tpu.dot_dimension_numbers<[1], [0], [0], [1], [0, 0, 1, 1], [], []>} : vector<8x512xbf16>, vector<512x128xbf16>, vector<8x128xf32> -> vector<8x128xf32>
    %c0_10 = arith.constant 0 : index
    %c0_11 = arith.constant 0 : index
    %12 = vector.load %arg7[%c0_10, %c0_11] : memref<1x128xf32, #tpu.memory_space<vmem>>, vector<1x128xf32>
    %13 = vector.broadcast %12 : vector<1x128xf32> to vector<8x128xf32>
    %14 = arith.addf %11, %13 : vector<8x128xf32>
    %cst_12 = arith.constant 0.000000e+00 : f32
    %15 = vector.broadcast %cst_12 : f32 to vector<8x128xf32>
    %16 = arith.maximumf %14, %15 : vector<8x128xf32>
    %17 = arith.truncf %16 : vector<8x128xf32> to vector<8x128xbf16>
    %c0_13 = arith.constant 0 : index
    %c0_14 = arith.constant 0 : index
    %18 = vector.load %arg8[%c0_13, %c0_14] : memref<128x128xbf16, #tpu.memory_space<vmem>>, vector<128x128xbf16>
    %cst_15 = arith.constant dense<0.000000e+00> : vector<8x128xf32>
    %19 = tpu.matmul %17, %18, %cst_15 {dimension_numbers = #tpu.dot_dimension_numbers<[1], [0], [0], [1], [0, 0, 1, 1], [], []>} : vector<8x128xbf16>, vector<128x128xbf16>, vector<8x128xf32> -> vector<8x128xf32>
    %c0_16 = arith.constant 0 : index
    %c0_17 = arith.constant 0 : index
    %20 = vector.load %arg9[%c0_16, %c0_17] : memref<1x128xf32, #tpu.memory_space<vmem>>, vector<1x128xf32>
    %21 = vector.broadcast %20 : vector<1x128xf32> to vector<8x128xf32>
    %22 = arith.addf %19, %21 : vector<8x128xf32>
    %23 = arith.negf %22 : vector<8x128xf32>
    %24 = math.exp %23 : vector<8x128xf32>
    %cst_18 = arith.constant 1.000000e+00 : f32
    %25 = vector.broadcast %cst_18 : f32 to vector<8x128xf32>
    %26 = arith.addf %25, %24 : vector<8x128xf32>
    %27 = arith.divf %25, %26 : vector<8x128xf32>
    %c0_19 = arith.constant 0 : index
    %c0_20 = arith.constant 0 : index
    %c0_21 = arith.constant 0 : index
    %28 = vector.load %arg2[%c0_19, %c0_20, %c0_21] : memref<1x8x256xbf16, #tpu.memory_space<vmem>>, vector<1x8x256xbf16>
    %29 = vector.shape_cast %28 : vector<1x8x256xbf16> to vector<8x256xbf16>
    %c0_22 = arith.constant 0 : index
    %c0_23 = arith.constant 0 : index
    %30 = vector.load %arg10[%c0_22, %c0_23] : memref<256x128xbf16, #tpu.memory_space<vmem>>, vector<256x128xbf16>
    %cst_24 = arith.constant dense<0.000000e+00> : vector<8x128xf32>
    %31 = tpu.matmul %29, %30, %cst_24 {dimension_numbers = #tpu.dot_dimension_numbers<[1], [0], [0], [1], [0, 0, 1, 1], [], []>} : vector<8x256xbf16>, vector<256x128xbf16>, vector<8x128xf32> -> vector<8x128xf32>
    %c0_25 = arith.constant 0 : index
    %c0_26 = arith.constant 0 : index
    %c0_27 = arith.constant 0 : index
    %32 = vector.load %arg3[%c0_25, %c0_26, %c0_27] : memref<1x8x256xbf16, #tpu.memory_space<vmem>>, vector<1x8x256xbf16>
    %33 = vector.shape_cast %32 : vector<1x8x256xbf16> to vector<8x256xbf16>
    %c0_28 = arith.constant 0 : index
    %c0_29 = arith.constant 0 : index
    %34 = vector.load %arg11[%c0_28, %c0_29] : memref<256x128xbf16, #tpu.memory_space<vmem>>, vector<256x128xbf16>
    %cst_30 = arith.constant dense<0.000000e+00> : vector<8x128xf32>
    %35 = tpu.matmul %33, %34, %cst_30 {dimension_numbers = #tpu.dot_dimension_numbers<[1], [0], [0], [1], [0, 0, 1, 1], [], []>} : vector<8x256xbf16>, vector<256x128xbf16>, vector<8x128xf32> -> vector<8x128xf32>
    %36 = arith.addf %31, %35 : vector<8x128xf32>
    %c0_31 = arith.constant 0 : index
    %c0_32 = arith.constant 0 : index
    %37 = vector.load %arg12[%c0_31, %c0_32] : memref<512x128xbf16, #tpu.memory_space<vmem>>, vector<512x128xbf16>
    %cst_33 = arith.constant dense<0.000000e+00> : vector<8x128xf32>
    %38 = tpu.matmul %9, %37, %cst_33 {dimension_numbers = #tpu.dot_dimension_numbers<[1], [0], [0], [1], [0, 0, 1, 1], [], []>} : vector<8x512xbf16>, vector<512x128xbf16>, vector<8x128xf32> -> vector<8x128xf32>
    %39 = arith.addf %36, %38 : vector<8x128xf32>
    %c0_34 = arith.constant 0 : index
    %c0_35 = arith.constant 0 : index
    %40 = vector.load %arg13[%c0_34, %c0_35] : memref<1x128xf32, #tpu.memory_space<vmem>>, vector<1x128xf32>
    %41 = vector.broadcast %40 : vector<1x128xf32> to vector<8x128xf32>
    %42 = arith.addf %39, %41 : vector<8x128xf32>
    %cst_36 = arith.constant 0.000000e+00 : f32
    %43 = vector.broadcast %cst_36 : f32 to vector<8x128xf32>
    %44 = arith.maximumf %42, %43 : vector<8x128xf32>
    %45 = arith.truncf %44 : vector<8x128xf32> to vector<8x128xbf16>
    %c0_37 = arith.constant 0 : index
    %c0_38 = arith.constant 0 : index
    %46 = vector.load %arg14[%c0_37, %c0_38] : memref<128x30xbf16, #tpu.memory_space<vmem>>, vector<128x30xbf16>
    %cst_39 = arith.constant dense<0.000000e+00> : vector<8x30xf32>
    %47 = tpu.matmul %45, %46, %cst_39 {dimension_numbers = #tpu.dot_dimension_numbers<[1], [0], [0], [1], [0, 0, 1, 1], [], []>} : vector<8x128xbf16>, vector<128x30xbf16>, vector<8x30xf32> -> vector<8x30xf32>
    %c0_40 = arith.constant 0 : index
    %c0_41 = arith.constant 0 : index
    %48 = vector.load %arg15[%c0_40, %c0_41] : memref<1x30xf32, #tpu.memory_space<vmem>>, vector<1x30xf32>
    %49 = vector.broadcast %48 : vector<1x30xf32> to vector<8x30xf32>
    %50 = arith.addf %47, %49 : vector<8x30xf32>
    %cst_42 = arith.constant 0.000000e+00 : f32
    %51 = vector.broadcast %cst_42 : f32 to vector<8x30xf32>
    %52 = arith.maximumf %50, %51 : vector<8x30xf32>
    %53 = vector.shape_cast %52 : vector<8x30xf32> to vector<1x8x30xf32>
    %cst_43 = arith.constant dense<0x7F800000> : vector<1xf32>
    %54 = vector.multi_reduction <minimumf>, %53, %cst_43 [1, 2] : vector<1x8x30xf32> to vector<1xf32>
    %55 = vector.shape_cast %54 : vector<1xf32> to vector<1x1x1xf32>
    %56 = vector.extract %55[0, 0, 0] : f32 from vector<1x1x1xf32>
    %57 = vector.broadcast %56 : f32 to vector<1x1xf32>
    %58 = vector.broadcast %57 : vector<1x1xf32> to vector<8x30xf32>
    %59 = arith.subf %52, %58 : vector<8x30xf32>
    %60 = vector.shape_cast %59 : vector<8x30xf32> to vector<1x8x30xf32>
    %cst_44 = arith.constant dense<0xFF800000> : vector<1xf32>
    %61 = vector.multi_reduction <maximumf>, %60, %cst_44 [1, 2] : vector<1x8x30xf32> to vector<1xf32>
    %62 = vector.shape_cast %61 : vector<1xf32> to vector<1x1x1xf32>
    %63 = vector.extract %62[0, 0, 0] : f32 from vector<1x1x1xf32>
    %64 = vector.broadcast %63 : f32 to vector<1x1xf32>
    %cst_45 = arith.constant 9.99999974E-5 : f32
    %65 = vector.broadcast %cst_45 : f32 to vector<1x1xf32>
    %66 = arith.maximumf %64, %65 : vector<1x1xf32>
    %67 = tpu.reciprocal %66 {approx = true} : vector<1x1xf32> -> vector<1x1xf32>
    %68 = vector.broadcast %67 : vector<1x1xf32> to vector<8x30xf32>
    %69 = arith.mulf %59, %68 : vector<8x30xf32>
    %cst_46 = arith.constant 5.000000e-01 : f32
    %70 = vector.broadcast %cst_46 : f32 to vector<8x30xf32>
    %71 = arith.subf %69, %70 : vector<8x30xf32>
    %cst_47 = arith.constant 1.000000e+01 : f32
    %72 = vector.broadcast %cst_47 : f32 to vector<8x30xf32>
    %73 = arith.mulf %72, %71 : vector<8x30xf32>
    %74 = arith.negf %73 : vector<8x30xf32>
    %75 = math.exp %74 : vector<8x30xf32>
    %cst_48 = arith.constant 1.000000e+00 : f32
    %76 = vector.broadcast %cst_48 : f32 to vector<8x30xf32>
    %77 = arith.addf %76, %75 : vector<8x30xf32>
    %78 = arith.divf %76, %77 : vector<8x30xf32>
    %cst_49 = arith.constant dense<0.000000e+00> : vector<30x128xf32>
    %79 = tpu.matmul %78, %27, %cst_49 {dimension_numbers = #tpu.dot_dimension_numbers<[0], [0], [1], [1], [0, 1, 1, 1], [], []>} : vector<8x30xf32>, vector<8x128xf32>, vector<30x128xf32> -> vector<30x128xf32>
    %cst_50 = arith.constant 1.250000e-01 : f32
    %80 = vector.broadcast %cst_50 : f32 to vector<30x128xf32>
    %81 = arith.mulf %79, %80 : vector<30x128xf32>
    %c0_51 = arith.constant 0 : index
    %c0_52 = arith.constant 0 : index
    %82 = vector.load %arg16[%c0_51, %c0_52] : memref<30x128xf32, #tpu.memory_space<vmem>>, vector<30x128xf32>
    %83 = arith.mulf %81, %82 : vector<30x128xf32>
    %cst_53 = arith.constant dense<0.000000e+00> : vector<30xf32>
    %84 = vector.multi_reduction <add>, %83, %cst_53 [1] : vector<30x128xf32> to vector<30xf32>
    %85 = vector.shape_cast %84 : vector<30xf32> to vector<30x1xf32>
    %86 = arith.mulf %81, %81 : vector<30x128xf32>
    %cst_54 = arith.constant dense<0.000000e+00> : vector<30xf32>
    %87 = vector.multi_reduction <add>, %86, %cst_54 [1] : vector<30x128xf32> to vector<30xf32>
    %88 = vector.shape_cast %87 : vector<30xf32> to vector<30x1xf32>
    %89 = math.sqrt %88 : vector<30x1xf32>
    %cst_55 = arith.constant 9.99999996E-13 : f32
    %90 = vector.broadcast %cst_55 : f32 to vector<30x1xf32>
    %91 = arith.maximumf %89, %90 : vector<30x1xf32>
    %92 = arith.divf %85, %91 : vector<30x1xf32>
    %cst_56 = arith.constant 0.000000e+00 : f32
    %93 = vector.broadcast %cst_56 : f32 to vector<30x1xf32>
    %94 = arith.maximumf %92, %93 : vector<30x1xf32>
    %c0_57 = arith.constant 0 : index
    %c0_58 = arith.constant 0 : index
    %95 = vector.load %arg17[%c0_57, %c0_58] : memref<2x30xf32, #tpu.memory_space<vmem>>, vector<2x30xf32>
    %cst_59 = arith.constant dense<0.000000e+00> : vector<2x1xf32>
    %96 = tpu.matmul %95, %94, %cst_59 {dimension_numbers = #tpu.dot_dimension_numbers<[1], [0], [0], [1], [0, 0, 1, 1], [], []>} : vector<2x30xf32>, vector<30x1xf32>, vector<2x1xf32> -> vector<2x1xf32>
    %c0_60 = arith.constant 0 : index
    %c0_61 = arith.constant 0 : index
    %c0_62 = arith.constant 0 : index
    %97 = vector.load %arg18[%c0_60, %c0_61, %c0_62] : memref<1x2x1xf32, #tpu.memory_space<vmem>>, vector<1x2x1xf32>
    %98 = vector.shape_cast %97 : vector<1x2x1xf32> to vector<2x1xf32>
    %99 = vector.shape_cast %96 : vector<2x1xf32> to vector<1x2x1xf32>
    tpu.vector_store %arg18[%c0_60, %c0_61, %c0_62], %99 {strides = array<i32>} : memref<1x2x1xf32, #tpu.memory_space<vmem>>, vector<1x2x1xf32>,
    return
  }
  func.func @transform_0(%arg0: i32) -> (i32, i32, i32) {
    %c0_i32 = arith.constant 0 : i32
    %c0_i32_0 = arith.constant 0 : i32
    %c0_i32_1 = arith.constant 0 : i32
    return %arg0, %c0_i32, %c0_i32_0 : i32, i32, i32
  }
  func.func @transform_1(%arg0: i32) -> (i32, i32, i32) {
    %c0_i32 = arith.constant 0 : i32
    %c0_i32_0 = arith.constant 0 : i32
    %c0_i32_1 = arith.constant 0 : i32
    return %arg0, %c0_i32, %c0_i32_0 : i32, i32, i32
  }
  func.func @transform_2(%arg0: i32) -> (i32, i32, i32) {
    %c0_i32 = arith.constant 0 : i32
    %c0_i32_0 = arith.constant 0 : i32
    %c0_i32_1 = arith.constant 0 : i32
    return %arg0, %c0_i32, %c0_i32_0 : i32, i32, i32
  }
  func.func @transform_3(%arg0: i32) -> (i32, i32) {
    %c0_i32 = arith.constant 0 : i32
    %c0_i32_0 = arith.constant 0 : i32
    %c0_i32_1 = arith.constant 0 : i32
    return %c0_i32, %c0_i32_0 : i32, i32
  }
  func.func @transform_4(%arg0: i32) -> (i32, i32) {
    %c0_i32 = arith.constant 0 : i32
    %c0_i32_0 = arith.constant 0 : i32
    %c0_i32_1 = arith.constant 0 : i32
    return %c0_i32, %c0_i32_0 : i32, i32
  }
  func.func @transform_5(%arg0: i32) -> (i32, i32) {
    %c0_i32 = arith.constant 0 : i32
    %c0_i32_0 = arith.constant 0 : i32
    %c0_i32_1 = arith.constant 0 : i32
    return %c0_i32, %c0_i32_0 : i32, i32
  }
  func.func @transform_6(%arg0: i32) -> (i32, i32) {
    %c0_i32 = arith.constant 0 : i32
    %c0_i32_0 = arith.constant 0 : i32
    %c0_i32_1 = arith.constant 0 : i32
    return %c0_i32, %c0_i32_0 : i32, i32
  }
  func.func @transform_7(%arg0: i32) -> (i32, i32) {
    %c0_i32 = arith.constant 0 : i32
    %c0_i32_0 = arith.constant 0 : i32
    %c0_i32_1 = arith.constant 0 : i32
    return %c0_i32, %c0_i32_0 : i32, i32
  }
  func.func @transform_8(%arg0: i32) -> (i32, i32) {
    %c0_i32 = arith.constant 0 : i32
    %c0_i32_0 = arith.constant 0 : i32
    %c0_i32_1 = arith.constant 0 : i32
    return %c0_i32, %c0_i32_0 : i32, i32
  }
  func.func @transform_9(%arg0: i32) -> (i32, i32) {
    %c0_i32 = arith.constant 0 : i32
    %c0_i32_0 = arith.constant 0 : i32
    %c0_i32_1 = arith.constant 0 : i32
    return %c0_i32, %c0_i32_0 : i32, i32
  }
  func.func @transform_10(%arg0: i32) -> (i32, i32) {
    %c0_i32 = arith.constant 0 : i32
    %c0_i32_0 = arith.constant 0 : i32
    %c0_i32_1 = arith.constant 0 : i32
    return %c0_i32, %c0_i32_0 : i32, i32
  }
  func.func @transform_11(%arg0: i32) -> (i32, i32) {
    %c0_i32 = arith.constant 0 : i32
    %c0_i32_0 = arith.constant 0 : i32
    %c0_i32_1 = arith.constant 0 : i32
    return %c0_i32, %c0_i32_0 : i32, i32
  }
  func.func @transform_12(%arg0: i32) -> (i32, i32) {
    %c0_i32 = arith.constant 0 : i32
    %c0_i32_0 = arith.constant 0 : i32
    %c0_i32_1 = arith.constant 0 : i32
    return %c0_i32, %c0_i32_0 : i32, i32
  }
  func.func @transform_13(%arg0: i32) -> (i32, i32) {
    %c0_i32 = arith.constant 0 : i32
    %c0_i32_0 = arith.constant 0 : i32
    %c0_i32_1 = arith.constant 0 : i32
    return %c0_i32, %c0_i32_0 : i32, i32
  }
  func.func @transform_14(%arg0: i32) -> (i32, i32) {
    %c0_i32 = arith.constant 0 : i32
    %c0_i32_0 = arith.constant 0 : i32
    %c0_i32_1 = arith.constant 0 : i32
    return %c0_i32, %c0_i32_0 : i32, i32
  }
  func.func @transform_15(%arg0: i32) -> (i32, i32) {
    %c0_i32 = arith.constant 0 : i32
    %c0_i32_0 = arith.constant 0 : i32
    %c0_i32_1 = arith.constant 0 : i32
    return %c0_i32, %c0_i32_0 : i32, i32
  }
  func.func @transform_16(%arg0: i32) -> (i32, i32) {
    %c0_i32 = arith.constant 0 : i32
    %c0_i32_0 = arith.constant 0 : i32
    %c0_i32_1 = arith.constant 0 : i32
    return %c0_i32, %c0_i32_0 : i32, i32
  }
  func.func @transform_17(%arg0: i32) -> (i32, i32, i32) {
    %c0_i32 = arith.constant 0 : i32
    %c0_i32_0 = arith.constant 0 : i32
    %c0_i32_1 = arith.constant 0 : i32
    return %arg0, %c0_i32, %c0_i32_0 : i32, i32, i32
  }
}

</mosaic_0001>

<bundles_post_ra>
// kernel: proto_nets_forward.2
= control target key start
LH: loop header
LB: loop body
LE: loop exit
PB: predicated region body
PF: predicated region fallthrough
CT: control target
= control target key end

     0   :  { %v390_v1 = vmov 0   ;;  %vm131_vm0 = vcmask 523264   ;;  %v41_v17 = vlaneseq  ;;  %s602_s1 = inlined_call_operand.vmem [shape: bf16[64,256], index: 1, kind: input, shape index: {}]   ;;  %s603_s0 = inlined_call_operand.vmem [shape: bf16[128,64], index: 0, kind: input, shape index: {}]   ;;  %s604_s2 = inlined_call_operand.vmem [shape: f32[1,256], index: 2, kind: input, shape index: {}]   ;;  %s605_s3 = inlined_call_operand.vmem [shape: f32[128,256], index: 3, kind: output, shape index: {}]  }
   0x1   :  { %v370_v0 = vld [vmem:[%s602_s1 + $0x34] ss:$8 sps:$4 sm:$0xff]   ;;  %188 = vmatprep.mubr.bf16.mxu0 %v390_v1  ;;  %228 = vmatprep.mubr.bf16.mxu1 %v390_v1  ;;  %v372_v2 = vld [vmem:[%s602_s1 + $0x30] ss:$8 sps:$4 sm:$0xff]   ;;  %v373_v3 = vld [vmem:[%s602_s1 + $0x24] ss:$8 sps:$4 sm:$0xff]  }
   0x2   :  { %164 = vmatprep.subr.bf16.mxu0 %v370_v0  ;;  %361 = vmatprep.subr.bf16.mxu1 %v370_v0  ;;  %v375_v4 = vld [vmem:[%s602_s1 + $0x20] ss:$8 sps:$4 sm:$0xff]   ;;  %v376_v5 = vld [vmem:[%s602_s1 + $0x14] ss:$8 sps:$4 sm:$0xff]   ;;  %v378_v6 = vld [vmem:[%s602_s1 + $0x10] ss:$8 sps:$4 sm:$0xff]  }
   0x3   :  { %165 = vmatpush1.bf16.msra.mxu0 %v372_v2  ;;  %365 = vmatpush1.bf16.msra.mxu1 %v372_v2  ;;  %v379_v7 = vld [vmem:[%s602_s1 + $0x4] ss:$8 sps:$4 sm:$0xff]   ;;  %v381_v8 = vld [vmem:[%s602_s1] ss:$8 sps:$4 sm:$0xff]   ;;  %v386_v13 = vld [vmem:[%s603_s0 + $0x10] sm:$0xff]   ;;  %v42_v18 = vshrl.u32 %v41_v17, 7 }
   0x4   :  { %166 = vmatprep.subr.bf16.mxu0 %v373_v3  ;;  %362 = vmatprep.subr.bf16.mxu1 %v373_v3  ;;  %v382_v9 = vld [vmem:[%s603_s0] sm:$0xff]   ;;  %v384_v11 = vld [vmem:[%s603_s0 + $0x8] sm:$0xff]   ;;  %v387_v14 = vld [vmem:[%s603_s0 + $0x30] sm:$0xff]  }
   0x5   :  { %v383_v10 = vld [vmem:[%s603_s0 + $0x20] sm:$0xff]   ;;  %v385_v12 = vld [vmem:[%s603_s0 + $0x28] sm:$0xff]   ;;  %v388_v15 = vld [vmem:[%s603_s0 + $0x18] sm:$0xff]   ;;  %v43_v19 = vsub.s32 0, %v42_v18  ;;  %v47_v21 = vsub.s32 1, %v42_v18 }
   0x6   :  { %v389_v16 = vld [vmem:[%s603_s0 + $0x38] sm:$0xff]   ;;  %v39_v20 = vld [vmem:[%s604_s2] sm:$0x3] }
   0x7   :  { %167 = vmatpush1.bf16.msra.mxu0 %v375_v4  ;;  %366 = vmatpush1.bf16.msra.mxu1 %v375_v4  ;;  %v470_v22 = vrot.slane %v39_v20, %v43_v19  ;;  %v472_v23 = vrot.slane %v39_v20, %v47_v21 }
   0x8   :  { %168 = vmatprep.subr.bf16.mxu0 %v376_v5  ;;  %363 = vmatprep.subr.bf16.mxu1 %v376_v5 }
   0xb   :  { %169 = vmatpush1.bf16.msra.mxu0 %v378_v6  ;;  %367 = vmatpush1.bf16.msra.mxu1 %v378_v6 }
   0xc   :  { %170 = vmatprep.subr.bf16.mxu0 %v379_v7  ;;  %364 = vmatprep.subr.bf16.mxu1 %v379_v7 }
   0xf   :  { %171 = vmatpush1.bf16.msra.mxu0 %v381_v8  ;;  %368 = vmatpush1.bf16.msra.mxu1 %v381_v8 }
  0x12   :  { %353 = vmatmul.mubr.msk.bf16.vlgmr.msra.gmra.mxu0 %vm131_vm0, %v382_v9  ;;  %357 = vmatmul.mubr.msk.bf16.vlgmr.msra.gmra.mxu1 %vm131_vm0, %v383_v10 }
  0x13   :  { %198 = vmatprep.mubr.bf16.mxu0 %v390_v1  ;;  %238 = vmatprep.mubr.bf16.mxu1 %v390_v1 }
  0x1a   :  { %354 = vmatmul.mubr.msk.bf16.gmra.mxu0 %vm131_vm0, %v384_v11  ;;  %358 = vmatmul.mubr.msk.bf16.gmra.mxu1 %vm131_vm0, %v385_v12 }
  0x1b   :  { %208 = vmatprep.mubr.bf16.mxu0 %v390_v1  ;;  %248 = vmatprep.mubr.bf16.mxu1 %v390_v1 }
  0x22   :  { %355 = vmatmul.mubr.msk.bf16.gmra.mxu0 %vm131_vm0, %v386_v13  ;;  %359 = vmatmul.mubr.msk.bf16.gmra.mxu1 %vm131_vm0, %v387_v14 }
  0x23   :  { %218 = vmatprep.mubr.bf16.mxu0 %v390_v1  ;;  %258 = vmatprep.mubr.bf16.mxu1 %v390_v1 }
  0x2a   :  { %356 = vmatmul.mubr.msk.bf16.gmra.mxu0 %vm131_vm0, %v388_v15  ;;  %360 = vmatmul.mubr.msk.bf16.gmra.mxu1 %vm131_vm0, %v389_v16 }
  0xd2   :  { %v190_v24 = vpop.f32.mrf.mxu0  ;;  %v230_v25 = vpop.f32.mrf.mxu1 }
  0xd3   :  { %v191_v26 = vadd.f32 %v190_v24, %v470_v22  ;;  %v231_v27 = vadd.f32 %v230_v25, %v470_v22 }
  0xd4   :  { %v192_v28 = vpop.f32.mrf.mxu0  ;;  %v232_v29 = vpop.f32.mrf.mxu1 }
  0xd5   :  { %v269_v30 = vmax.f32 %v191_v26, 0.0  ;;  %v285_v31 = vmax.f32 %v231_v27, 0.0  ;;  %v193_v32 = vadd.f32 %v192_v28, %v472_v23  ;;  %v233_v33 = vadd.f32 %v232_v29, %v472_v23 }
  0xd6   :  { %v194_v34 = vpop.f32.mrf.mxu0  ;;  %v234_v35 = vpop.f32.mrf.mxu1 }
  0xd7   :  { %301 = vst [vmem:[%s605_s3] sm:$0xff] %v269_v30  ;;  %317 = vst [vmem:[%s605_s3 + $0x80] sm:$0xff] %v285_v31  ;;  %v270_v36 = vmax.f32 %v193_v32, 0.0  ;;  %v286_v37 = vmax.f32 %v233_v33, 0.0  ;;  %v195_v38 = vadd.f32 %v194_v34, %v470_v22  ;;  %v235_v39 = vadd.f32 %v234_v35, %v470_v22 }
  0xd8   :  { %v196_v40 = vpop.f32.mrf.mxu0  ;;  %v236_v41 = vpop.f32.mrf.mxu1 }
  0xd9   :  { %302 = vst [vmem:[%s605_s3 + $0x8] sm:$0xff] %v270_v36  ;;  %318 = vst [vmem:[%s605_s3 + $0x88] sm:$0xff] %v286_v37  ;;  %v271_v42 = vmax.f32 %v195_v38, 0.0  ;;  %v287_v43 = vmax.f32 %v235_v39, 0.0  ;;  %v197_v44 = vadd.f32 %v196_v40, %v472_v23  ;;  %v237_v45 = vadd.f32 %v236_v41, %v472_v23 }
  0xda   :  { %v200_v46 = vpop.f32.mrf.mxu0  ;;  %v240_v47 = vpop.f32.mrf.mxu1 }
  0xdb   :  { %303 = vst [vmem:[%s605_s3 + $0x10] sm:$0xff] %v271_v42  ;;  %319 = vst [vmem:[%s605_s3 + $0x90] sm:$0xff] %v287_v43  ;;  %v272_v48 = vmax.f32 %v197_v44, 0.0  ;;  %v288_v49 = vmax.f32 %v237_v45, 0.0  ;;  %v201_v50 = vadd.f32 %v200_v46, %v470_v22  ;;  %v241_v51 = vadd.f32 %v240_v47, %v470_v22 }
  0xdc   :  { %v202_v52 = vpop.f32.mrf.mxu0  ;;  %v242_v53 = vpop.f32.mrf.mxu1 }
  0xdd   :  { %304 = vst [vmem:[%s605_s3 + $0x18] sm:$0xff] %v272_v48  ;;  %320 = vst [vmem:[%s605_s3 + $0x98] sm:$0xff] %v288_v49  ;;  %v273_v54 = vmax.f32 %v201_v50, 0.0  ;;  %v289_v55 = vmax.f32 %v241_v51, 0.0  ;;  %v203_v56 = vadd.f32 %v202_v52, %v472_v23  ;;  %v243_v57 = vadd.f32 %v242_v53, %v472_v23 }
  0xde   :  { %v204_v58 = vpop.f32.mrf.mxu0  ;;  %v244_v59 = vpop.f32.mrf.mxu1 }
  0xdf   :  { %305 = vst [vmem:[%s605_s3 + $0x20] sm:$0xff] %v273_v54  ;;  %321 = vst [vmem:[%s605_s3 + $0xa0] sm:$0xff] %v289_v55  ;;  %v274_v60 = vmax.f32 %v203_v56, 0.0  ;;  %v290_v61 = vmax.f32 %v243_v57, 0.0  ;;  %v205_v62 = vadd.f32 %v204_v58, %v470_v22  ;;  %v245_v63 = vadd.f32 %v244_v59, %v470_v22 }
  0xe0   :  { %v206_v0 = vpop.f32.mrf.mxu0  ;;  %v246_v1 = vpop.f32.mrf.mxu1 }
  0xe1   :  { %306 = vst [vmem:[%s605_s3 + $0x28] sm:$0xff] %v274_v60  ;;  %322 = vst [vmem:[%s605_s3 + $0xa8] sm:$0xff] %v290_v61  ;;  %v275_v2 = vmax.f32 %v205_v62, 0.0  ;;  %v291_v3 = vmax.f32 %v245_v63, 0.0  ;;  %v207_v4 = vadd.f32 %v206_v0, %v472_v23  ;;  %v247_v5 = vadd.f32 %v246_v1, %v472_v23 }
  0xe2   :  { %v210_v6 = vpop.f32.mrf.mxu0  ;;  %v250_v7 = vpop.f32.mrf.mxu1 }
  0xe3   :  { %307 = vst [vmem:[%s605_s3 + $0x30] sm:$0xff] %v275_v2  ;;  %323 = vst [vmem:[%s605_s3 + $0xb0] sm:$0xff] %v291_v3  ;;  %v276_v8 = vmax.f32 %v207_v4, 0.0  ;;  %v292_v9 = vmax.f32 %v247_v5, 0.0  ;;  %v211_v10 = vadd.f32 %v210_v6, %v470_v22  ;;  %v251_v11 = vadd.f32 %v250_v7, %v470_v22 }
  0xe4   :  { %v212_v12 = vpop.f32.mrf.mxu0  ;;  %v252_v13 = vpop.f32.mrf.mxu1 }
  0xe5   :  { %308 = vst [vmem:[%s605_s3 + $0x38] sm:$0xff] %v276_v8  ;;  %324 = vst [vmem:[%s605_s3 + $0xb8] sm:$0xff] %v292_v9  ;;  %v277_v14 = vmax.f32 %v211_v10, 0.0  ;;  %v293_v15 = vmax.f32 %v251_v11, 0.0  ;;  %v213_v16 = vadd.f32 %v212_v12, %v472_v23  ;;  %v253_v17 = vadd.f32 %v252_v13, %v472_v23 }
  0xe6   :  { %v214_v18 = vpop.f32.mrf.mxu0  ;;  %v254_v19 = vpop.f32.mrf.mxu1 }
  0xe7   :  { %309 = vst [vmem:[%s605_s3 + $0x40] sm:$0xff] %v277_v14  ;;  %325 = vst [vmem:[%s605_s3 + $0xc0] sm:$0xff] %v293_v15  ;;  %v278_v20 = vmax.f32 %v213_v16, 0.0  ;;  %v294_v21 = vmax.f32 %v253_v17, 0.0  ;;  %v215_v24 = vadd.f32 %v214_v18, %v470_v22  ;;  %v255_v25 = vadd.f32 %v254_v19, %v470_v22 }
  0xe8   :  { %v216_v26 = vpop.f32.mrf.mxu0  ;;  %v256_v27 = vpop.f32.mrf.mxu1 }
  0xe9   :  { %310 = vst [vmem:[%s605_s3 + $0x48] sm:$0xff] %v278_v20  ;;  %326 = vst [vmem:[%s605_s3 + $0xc8] sm:$0xff] %v294_v21  ;;  %v279_v28 = vmax.f32 %v215_v24, 0.0  ;;  %v295_v29 = vmax.f32 %v255_v25, 0.0  ;;  %v217_v30 = vadd.f32 %v216_v26, %v472_v23  ;;  %v257_v31 = vadd.f32 %v256_v27, %v472_v23 }
  0xea   :  { %v220_v32 = vpop.f32.mrf.mxu0  ;;  %v260_v33 = vpop.f32.mrf.mxu1 }
  0xeb   :  { %311 = vst [vmem:[%s605_s3 + $0x50] sm:$0xff] %v279_v28  ;;  %327 = vst [vmem:[%s605_s3 + $0xd0] sm:$0xff] %v295_v29  ;;  %v280_v34 = vmax.f32 %v217_v30, 0.0  ;;  %v296_v35 = vmax.f32 %v257_v31, 0.0  ;;  %v221_v36 = vadd.f32 %v220_v32, %v470_v22  ;;  %v261_v37 = vadd.f32 %v260_v33, %v470_v22 }
  0xec   :  { %v222_v38 = vpop.f32.mrf.mxu0  ;;  %v262_v39 = vpop.f32.mrf.mxu1 }
  0xed   :  { %312 = vst [vmem:[%s605_s3 + $0x58] sm:$0xff] %v280_v34  ;;  %328 = vst [vmem:[%s605_s3 + $0xd8] sm:$0xff] %v296_v35  ;;  %v281_v40 = vmax.f32 %v221_v36, 0.0  ;;  %v297_v41 = vmax.f32 %v261_v37, 0.0  ;;  %v223_v42 = vadd.f32 %v222_v38, %v472_v23  ;;  %v263_v43 = vadd.f32 %v262_v39, %v472_v23 }
  0xee   :  { %v224_v44 = vpop.f32.mrf.mxu0  ;;  %v264_v45 = vpop.f32.mrf.mxu1 }
  0xef   :  { %313 = vst [vmem:[%s605_s3 + $0x60] sm:$0xff] %v281_v40  ;;  %329 = vst [vmem:[%s605_s3 + $0xe0] sm:$0xff] %v297_v41  ;;  %v282_v46 = vmax.f32 %v223_v42, 0.0  ;;  %v298_v47 = vmax.f32 %v263_v43, 0.0  ;;  %v225_v48 = vadd.f32 %v224_v44, %v470_v22  ;;  %v265_v49 = vadd.f32 %v264_v45, %v470_v22 }
  0xf0   :  { %v226_v50 = vpop.f32.mrf.mxu0  ;;  %v266_v51 = vpop.f32.mrf.mxu1 }
  0xf1   :  { %314 = vst [vmem:[%s605_s3 + $0x68] sm:$0xff] %v282_v46  ;;  %330 = vst [vmem:[%s605_s3 + $0xe8] sm:$0xff] %v298_v47  ;;  %v283_v52 = vmax.f32 %v225_v48, 0.0  ;;  %v299_v53 = vmax.f32 %v265_v49, 0.0  ;;  %v227_v54 = vadd.f32 %v226_v50, %v472_v23  ;;  %v267_v55 = vadd.f32 %v266_v51, %v472_v23 }
  0xf3   :  { %315 = vst [vmem:[%s605_s3 + $0x70] sm:$0xff] %v283_v52  ;;  %331 = vst [vmem:[%s605_s3 + $0xf0] sm:$0xff] %v299_v53  ;;  %v284_v22 = vmax.f32 %v227_v54, 0.0  ;;  %v300_v56 = vmax.f32 %v267_v55, 0.0 }
  0xf5   :  { %316 = vst [vmem:[%s605_s3 + $0x78] sm:$0xff] %v284_v22  ;;  %332 = vst [vmem:[%s605_s3 + $0xf8] sm:$0xff] %v300_v56 }

// kernel: proto_nets_forward.3
= control target key start
LH: loop header
LB: loop body
LE: loop exit
PB: predicated region body
PF: predicated region fallthrough
CT: control target
= control target key end

     0   :  { %s3550_s24 = smov 0   ;;  %s4197_s0 = inlined_call_operand.vmem [shape: bf16[2,8,256], index: 0, kind: input, shape index: {}]   ;;  %s4198_s1 = inlined_call_operand.vmem [shape: bf16[2,8,256], index: 1, kind: input, shape index: {}]   ;;  %s4199_s2 = inlined_call_operand.vmem [shape: bf16[2,8,256], index: 2, kind: input, shape index: {}]   ;;  %s4200_s3 = inlined_call_operand.vmem [shape: bf16[256,512], index: 3, kind: input, shape index: {}]   ;;  %s4201_s4 = inlined_call_operand.vmem [shape: f32[1,512], index: 4, kind: input, shape index: {}]   ;;  %s4202_s5 = inlined_call_operand.vmem [shape: bf16[512,128], index: 5, kind: input, shape index: {}]   ;;  %s4203_s6 = inlined_call_operand.vmem [shape: f32[1,128], index: 6, kind: input, shape index: {}]   ;;  %s4204_s7 = inlined_call_operand.vmem [shape: bf16[128,128], index: 7, kind: input, shape index: {}]   ;;  %s4205_s8 = inlined_call_operand.vmem [shape: f32[1,128], index: 8, kind: input, shape index: {}]   ;;  %s4206_s9 = inlined_call_operand.vmem [shape: bf16[256,128], index: 9, kind: input, shape index: {}]   ;;  %s4207_s10 = inlined_call_operand.vmem [shape: bf16[256,128], index: 10, kind: input, shape index: {}]   ;;  %s4208_s11 = inlined_call_operand.vmem [shape: bf16[512,128], index: 11, kind: input, shape index: {}]   ;;  %s4209_s12 = inlined_call_operand.vmem [shape: f32[1,128], index: 12, kind: input, shape index: {}]   ;;  %s4210_s13 = inlined_call_operand.vmem [shape: bf16[128,30], index: 13, kind: input, shape index: {}]   ;;  %s4211_s14 = inlined_call_operand.vmem [shape: f32[1,30], index: 14, kind: input, shape index: {}]   ;;  %s4212_s15 = inlined_call_operand.vmem [shape: f32[30,128], index: 15, kind: input, shape index: {}]   ;;  %s4213_s16 = inlined_call_operand.vmem [shape: f32[2,30], index: 16, kind: input, shape index: {}]   ;;  %s4214_s17 = inlined_call_operand.vmem [shape: f32[2,2,1], index: 17, kind: output, shape index: {}]  }
   0x1   :  { %4215 = sst [smem:[#allocation2_spill]] %s4197_s0 }
   0x2   :  { %4216 = sst [smem:[#allocation3_spill]] %s4198_s1 }
   0x3 LB: > { %s2765_s25 = sadd.s32 4294967295, %s3456_s24   ;;  %p2769_p0 = scmp.ge.s32.totalorder %s3456_s24, 1  ;;  %s3456_s24 = sphi %s3550_s24, %s27_s24  }
   0x4   : > { %p507_p1 = scmp.lt.s32.totalorder %s3456_s24, 3 }
   0x6   : > { %p508_p2 = pnand %p2769_p0, %p507_p1 }
   0x7   : > { %p568_p3 = scmp.lt.s32.totalorder (!%p508_p2), %s2765_s25, 1  ;;  %s4217_s26 = sld [smem:[#allocation2_spill]] (!%p508_p2) }
   0x8   : > { %511 = sbr.rel (%p508_p2) target bundleno = 2126 (0x84e), region = 88  ;;  %s4218_s18 = sld [smem:[#allocation3_spill]] (!%p508_p2) }
   0xd   : > { %v3210_v0 = vld [vmem:[%s4200_s3 + $0xe4] ss:$16 sps:$4 sm:$0xff]   ;;  %v3212_v1 = vld [vmem:[%s4200_s3 + $0xec] ss:$16 sps:$4 sm:$0xff]   ;;  %v3214_v2 = vld [vmem:[%s4200_s3 + $0xe0] ss:$16 sps:$4 sm:$0xff]  }
   0xe   : > { %1002 = vmatprep.subr.bf16.mxu0 %v3210_v0  ;;  %v3215_v3 = vld [vmem:[%s4200_s3 + $0xe8] ss:$16 sps:$4 sm:$0xff]   ;;  %1043 = vmatprep.subr.bf16.mxu1 %v3212_v1  ;;  %v3216_v4 = vld [vmem:[%s4200_s3 + $0xc4] ss:$16 sps:$4 sm:$0xff]   ;;  %v3218_v5 = vld [vmem:[%s4200_s3 + $0xcc] ss:$16 sps:$4 sm:$0xff]  }
   0xf   : > { %1003 = vmatpush1.bf16.msra.mxu0 %v3214_v2  ;;  %1044 = vmatpush1.bf16.msra.mxu1 %v3215_v3  ;;  %v3220_v6 = vld [vmem:[%s4200_s3 + $0xc0] ss:$16 sps:$4 sm:$0xff]   ;;  %v3221_v7 = vld [vmem:[%s4200_s3 + $0xc8] ss:$16 sps:$4 sm:$0xff]   ;;  %v3222_v8 = vld [vmem:[%s4200_s3 + $0xa4] ss:$16 sps:$4 sm:$0xff]  }
  0x10   : > { %1004 = vmatprep.subr.bf16.mxu0 %v3216_v4  ;;  %1045 = vmatprep.subr.bf16.mxu1 %v3218_v5  ;;  %v3224_v9 = vld [vmem:[%s4200_s3 + $0xac] ss:$16 sps:$4 sm:$0xff]   ;;  %v3226_v10 = vld [vmem:[%s4200_s3 + $0xa0] ss:$16 sps:$4 sm:$0xff]   ;;  %v3227_v11 = vld [vmem:[%s4200_s3 + $0xa8] ss:$16 sps:$4 sm:$0xff]  }
  0x11   : > { %v3228_v12 = vld [vmem:[%s4200_s3 + $0x84] ss:$16 sps:$4 sm:$0xff]   ;;  %v3230_v13 = vld [vmem:[%s4200_s3 + $0x8c] ss:$16 sps:$4 sm:$0xff]   ;;  %v3232_v14 = vld [vmem:[%s4200_s3 + $0x80] ss:$16 sps:$4 sm:$0xff]  }
  0x12   : > { %v3233_v15 = vld [vmem:[%s4200_s3 + $0x88] ss:$16 sps:$4 sm:$0xff]   ;;  %v3234_v16 = vld [vmem:[%s4200_s3 + $0x64] ss:$16 sps:$4 sm:$0xff]   ;;  %v3236_v17 = vld [vmem:[%s4200_s3 + $0x6c] ss:$16 sps:$4 sm:$0xff]  }
  0x13   : > { %1005 = vmatpush1.bf16.msra.mxu0 %v3220_v6  ;;  %1046 = vmatpush1.bf16.msra.mxu1 %v3221_v7  ;;  %v3238_v18 = vld [vmem:[%s4200_s3 + $0x60] ss:$16 sps:$4 sm:$0xff]   ;;  %v3239_v19 = vld [vmem:[%s4200_s3 + $0x68] ss:$16 sps:$4 sm:$0xff]   ;;  %v3240_v20 = vld [vmem:[%s4200_s3 + $0x44] ss:$16 sps:$4 sm:$0xff]  }
  0x14   : > { %1006 = vmatprep.subr.bf16.mxu0 %v3222_v8  ;;  %1047 = vmatprep.subr.bf16.mxu1 %v3224_v9  ;;  %v3242_v21 = vld [vmem:[%s4200_s3 + $0x4c] ss:$16 sps:$4 sm:$0xff]   ;;  %v3244_v22 = vld [vmem:[%s4200_s3 + $0x40] ss:$16 sps:$4 sm:$0xff]   ;;  %v3245_v23 = vld [vmem:[%s4200_s3 + $0x48] ss:$16 sps:$4 sm:$0xff]  }
  0x15   : > { %v3246_v24 = vld [vmem:[%s4200_s3 + $0x24] ss:$16 sps:$4 sm:$0xff]   ;;  %v3248_v25 = vld [vmem:[%s4200_s3 + $0x2c] ss:$16 sps:$4 sm:$0xff]   ;;  %v3250_v26 = vld [vmem:[%s4200_s3 + $0x20] ss:$16 sps:$4 sm:$0xff]  }
  0x16   : > { %v3251_v27 = vld [vmem:[%s4200_s3 + $0x28] ss:$16 sps:$4 sm:$0xff]   ;;  %v3252_v28 = vld [vmem:[%s4200_s3 + $0x4] ss:$16 sps:$4 sm:$0xff]   ;;  %v3254_v29 = vld [vmem:[%s4200_s3 + $0xc] ss:$16 sps:$4 sm:$0xff]  }
  0x17   : > { %1007 = vmatpush1.bf16.msra.mxu0 %v3226_v10  ;;  %1048 = vmatpush1.bf16.msra.mxu1 %v3227_v11  ;;  %v3256_v30 = vld [vmem:[%s4200_s3] ss:$16 sps:$4 sm:$0xff]   ;;  %v3257_v31 = vld [vmem:[%s4200_s3 + $0x8] ss:$16 sps:$4 sm:$0xff]   ;;  %v3258_v32 = vld [vmem:[%s4200_s3 + $0x1e4] ss:$16 sps:$4 sm:$0xff]  }
  0x18   : > { %1008 = vmatprep.subr.bf16.mxu0 %v3228_v12  ;;  %1049 = vmatprep.subr.bf16.mxu1 %v3230_v13  ;;  %v3260_v33 = vld [vmem:[%s4200_s3 + $0x1ec] ss:$16 sps:$4 sm:$0xff]   ;;  %v3262_v34 = vld [vmem:[%s4200_s3 + $0x1e0] ss:$16 sps:$4 sm:$0xff]   ;;  %v3263_v35 = vld [vmem:[%s4200_s3 + $0x1e8] ss:$16 sps:$4 sm:$0xff]  }
  0x19   : > { %v3264_v36 = vld [vmem:[%s4200_s3 + $0x1c4] ss:$16 sps:$4 sm:$0xff]   ;;  %s4220_s25 = smov (!%p568_p3, %s2765_s25), 1  ;;  %v3266_v37 = vld [vmem:[%s4200_s3 + $0x1cc] ss:$16 sps:$4 sm:$0xff]   ;;  %vm3459_vm0 = vmmov 0  }
  0x1a   : > { %v3268_v38 = vld [vmem:[%s4200_s3 + $0x1c0] ss:$16 sps:$4 sm:$0xff]   ;;  %v3269_v39 = vld [vmem:[%s4200_s3 + $0x1c8] ss:$16 sps:$4 sm:$0xff]   ;;  %v3270_v40 = vld [vmem:[%s4200_s3 + $0x1a4] ss:$16 sps:$4 sm:$0xff]  }
  0x1b   : > { %1009 = vmatpush1.bf16.msra.mxu0 %v3232_v14  ;;  %1050 = vmatpush1.bf16.msra.mxu1 %v3233_v15  ;;  %s3688_s0 = sshll.u32 %s4220_s25, 3  ;;  %v3272_v41 = vld [vmem:[%s4200_s3 + $0x1ac] ss:$16 sps:$4 sm:$0xff]   ;;  %v3274_v42 = vld [vmem:[%s4200_s3 + $0x1a0] ss:$16 sps:$4 sm:$0xff]   ;;  %vm2365_vm1 = vcmask 244736  }
  0x1c   : > { %1010 = vmatprep.subr.bf16.mxu0 %v3234_v16  ;;  %1051 = vmatprep.subr.bf16.mxu1 %v3236_v17  ;;  %v3275_v43 = vld [vmem:[%s4200_s3 + $0x1a8] ss:$16 sps:$4 sm:$0xff]   ;;  %s572_s27 = scalar_lea.vmem %s4217_s26, %s3688_s0  ;;  %v3276_v44 = vld [vmem:[%s4200_s3 + $0x184] ss:$16 sps:$4 sm:$0xff]   ;;  %v3278_v45 = vld [vmem:[%s4200_s3 + $0x18c] ss:$16 sps:$4 sm:$0xff]   ;;  %s577_s19 = scalar_lea.vmem %s4218_s18, %s3688_s0 }
  0x1d   : > { %v3280_v46 = vld [vmem:[%s4200_s3 + $0x180] ss:$16 sps:$4 sm:$0xff]   ;;  %v3281_v48 = vld [vmem:[%s4200_s3 + $0x188] ss:$16 sps:$4 sm:$0xff]   ;;  %v3282_v50 = vld [vmem:[%s4200_s3 + $0x164] ss:$16 sps:$4 sm:$0xff]  }
  0x1e   : > { %v588_v47 = vld [vmem:[%s572_s27] sm:$0xff]  ;;  %v3284_v51 = vld [vmem:[%s4200_s3 + $0x16c] ss:$16 sps:$4 sm:$0xff]   ;;  %v3287_v53 = vld [vmem:[%s4200_s3 + $0x168] ss:$16 sps:$4 sm:$0xff]   ;;  %s582_s27 = scalar_lea.vmem %s4199_s2, %s3688_s0  ;;  %vm2432_vm2 = vcmask 64512  }
  0x1f   : > { %1011 = vmatpush1.bf16.msra.mxu0 %v3238_v18  ;;  %1052 = vmatpush1.bf16.msra.mxu1 %v3239_v19  ;;  %v2778_v49 = vcombine.high %v588_v47, %v588_v47  ;;  %v3286_v52 = vld [vmem:[%s4200_s3 + $0x160] ss:$16 sps:$4 sm:$0xff]   ;;  %v3288_v54 = vld [vmem:[%s4200_s3 + $0x144] ss:$16 sps:$4 sm:$0xff]   ;;  %v3290_v55 = vld [vmem:[%s4200_s3 + $0x14c] ss:$16 sps:$4 sm:$0xff]   ;;  %v2777_v5 = vcombine.low %v588_v47, %v588_v47 }
  0x20   : > { %1012 = vmatprep.subr.bf16.mxu0 %v3240_v20  ;;  %1053 = vmatprep.subr.bf16.mxu1 %v3242_v21  ;;  %v3292_v56 = vld [vmem:[%s4200_s3 + $0x140] ss:$16 sps:$4 sm:$0xff]   ;;  %v3293_v57 = vld [vmem:[%s4200_s3 + $0x148] ss:$16 sps:$4 sm:$0xff]   ;;  %v3294_v58 = vld [vmem:[%s4200_s3 + $0x124] ss:$16 sps:$4 sm:$0xff]  }
  0x21   : > { %1034 = vmatprep.mubr.bf16.mxu0 %v2778_v49  ;;  %1075 = vmatprep.mubr.bf16.mxu1 %v2778_v49  ;;  %v3296_v59 = vld [vmem:[%s4200_s3 + $0x12c] ss:$16 sps:$4 sm:$0xff]   ;;  %v3298_v60 = vld [vmem:[%s4200_s3 + $0x120] ss:$16 sps:$4 sm:$0xff]   ;;  %v3299_v61 = vld [vmem:[%s4200_s3 + $0x128] ss:$16 sps:$4 sm:$0xff]  }
  0x22   : > { %v3300_v62 = vld [vmem:[%s4200_s3 + $0x104] ss:$16 sps:$4 sm:$0xff]   ;;  %v3302_v63 = vld [vmem:[%s4200_s3 + $0x10c] ss:$16 sps:$4 sm:$0xff]   ;;  %v3304_v0 = vld [vmem:[%s4200_s3 + $0x100] ss:$16 sps:$4 sm:$0xff]  }
  0x23   : > { %1013 = vmatpush1.bf16.msra.mxu0 %v3244_v22  ;;  %1054 = vmatpush1.bf16.msra.mxu1 %v3245_v23  ;;  %v3305_v1 = vld [vmem:[%s4200_s3 + $0x108] ss:$16 sps:$4 sm:$0xff]   ;;  %v3312_v7 = vld [vmem:[%s4202_s5 + $0xf0] sm:$0xff]   ;;  %v3320_v15 = vld [vmem:[%s4202_s5 + $0xe0] sm:$0xff]   ;;  %vm2548_vm3 = vcmask 1045504   ;;  %s2776_s23 = sshll.u32 %s4220_s25, 1 }
  0x24   : > { %1014 = vmatprep.subr.bf16.mxu0 %v3246_v24  ;;  %1055 = vmatprep.subr.bf16.mxu1 %v3248_v25  ;;  %v3308_v2 = vld [vmem:[%s4202_s5 + $0xf8] sm:$0xff]   ;;  %v3313_v8 = vld [vmem:[%s4202_s5 + $0x70] sm:$0xff]   ;;  %v3316_v11 = vld [vmem:[%s4202_s5 + $0xe8] sm:$0xff]   ;;  %s586_s29 = scalar_lea.vmem %s4214_s17, %s2776_s23  ;;  %vm2686_vm12 = vcmask 1024  }
  0x25   : > { %v3309_v3 = vld [vmem:[%s4202_s5 + $0x78] sm:$0xff]   ;;  %v3314_v9 = vld [vmem:[%s4202_s5 + $0xb0] sm:$0xff]   ;;  %v3317_v12 = vld [vmem:[%s4202_s5 + $0x68] sm:$0xff]  }
  0x26   : > { %v3310_v4 = vld [vmem:[%s4202_s5 + $0xb8] sm:$0xff]   ;;  %v3315_v10 = vld [vmem:[%s4202_s5 + $0x30] sm:$0xff]   ;;  %v3318_v13 = vld [vmem:[%s4202_s5 + $0xa8] sm:$0xff]  }
  0x27   : > { %1015 = vmatpush1.bf16.msra.mxu0 %v3250_v26  ;;  %1056 = vmatpush1.bf16.msra.mxu1 %v3251_v27  ;;  %v3311_v6 = vld [vmem:[%s4202_s5 + $0x38] sm:$0xff]   ;;  %v3319_v14 = vld [vmem:[%s4202_s5 + $0x28] sm:$0xff]   ;;  %v3321_v16 = vld [vmem:[%s4202_s5 + $0x60] sm:$0xff]  }
  0x28   : > { %1016 = vmatprep.subr.bf16.mxu0 %v3252_v28  ;;  %1057 = vmatprep.subr.bf16.mxu1 %v3254_v29  ;;  %v3322_v17 = vld [vmem:[%s4202_s5 + $0xa0] sm:$0xff]   ;;  %v3324_v19 = vld [vmem:[%s4202_s5 + $0xd8] sm:$0xff]   ;;  %v3328_v23 = vld [vmem:[%s4202_s5 + $0xd0] sm:$0xff]  }
  0x29   : > { %v3323_v18 = vld [vmem:[%s4202_s5 + $0x20] sm:$0xff]   ;;  %v3325_v20 = vld [vmem:[%s4202_s5 + $0x58] sm:$0xff]   ;;  %v3329_v24 = vld [vmem:[%s4202_s5 + $0x50] sm:$0xff]  }
  0x2a   : > { %v3326_v21 = vld [vmem:[%s4202_s5 + $0x98] sm:$0xff]   ;;  %v3330_v25 = vld [vmem:[%s4202_s5 + $0x90] sm:$0xff]   ;;  %v3332_v27 = vld [vmem:[%s4202_s5 + $0xc8] sm:$0xff]  }
  0x2b   : > { %1017 = vmatpush1.bf16.msra.mxu0 %v3256_v30  ;;  %1058 = vmatpush1.bf16.msra.mxu1 %v3257_v31  ;;  %v3327_v22 = vld [vmem:[%s4202_s5 + $0x18] sm:$0xff]   ;;  %v3331_v26 = vld [vmem:[%s4202_s5 + $0x10] sm:$0xff]   ;;  %v3333_v28 = vld [vmem:[%s4202_s5 + $0x48] sm:$0xff]  }
  0x2c   : > { %1018 = vmatprep.subr.bf16.mxu0 %v3258_v32  ;;  %1059 = vmatprep.subr.bf16.mxu1 %v3260_v33  ;;  %v3334_v29 = vld [vmem:[%s4202_s5 + $0x88] sm:$0xff]   ;;  %v3336_v31 = vld [vmem:[%s4202_s5 + $0xc0] sm:$0xff]  }
  0x2d   : > { %v3335_v30 = vld [vmem:[%s4202_s5 + $0x8] sm:$0xff]   ;;  %v3337_v32 = vld [vmem:[%s4202_s5 + $0x40] sm:$0xff]  }
  0x2e   : > { %v3338_v33 = vld [vmem:[%s4202_s5 + $0x80] sm:$0xff]  }
  0x2f   : > { %1019 = vmatpush2.bf16.msra.mxu0 %v3262_v34  ;;  %1060 = vmatpush2.bf16.msra.mxu1 %v3263_v35  ;;  %v3339_v34 = vld [vmem:[%s4202_s5] sm:$0xff]   ;;  %v3340_v35 = vld [vmem:[%s4207_s10 + $0x78] sm:$0xff]  }
  0x30   : > { %1020 = vmatprep.subr.bf16.mxu0 %v3264_v36  ;;  %1061 = vmatprep.subr.bf16.mxu1 %v3266_v37  ;;  %v3458_v36 = vmov 0.0   ;;  %v655_v37 = vlaneseq }
  0x33   : > { %1021 = vmatpush2.bf16.msra.mxu0 %v3268_v38  ;;  %1062 = vmatpush2.bf16.msra.mxu1 %v3269_v39  ;;  %v656_v38 = vshrl.u32 %v655_v37, 7  ;;  %v3367_v37 = vld [vmem:[%s4208_s11 + $0x18] sm:$0xff]  }
  0x34   : > { %1022 = vmatprep.subr.bf16.mxu0 %v3270_v40  ;;  %1063 = vmatprep.subr.bf16.mxu1 %v3272_v41  ;;  %v653_v41 = vld [vmem:[%s4201_s4] sm:$0xf] }
  0x35   : > { %v657_v39 = vsub.s32 0, %v656_v38  ;;  %v665_v40 = vsub.s32 2, %v656_v38 }
  0x37   : > { %1023 = vmatpush2.bf16.msra.mxu0 %v3274_v42  ;;  %1064 = vmatpush2.bf16.msra.mxu1 %v3275_v43  ;;  %v661_v42 = vsub.s32 1, %v656_v38  ;;  %v669_v43 = vsub.s32 3, %v656_v38  ;;  %v3368_v38 = vld [vmem:[%s4208_s11 + $0x50] sm:$0xff]  }
  0x38   : > { %1024 = vmatprep.subr.bf16.mxu0 %v3276_v44  ;;  %1065 = vmatprep.subr.bf16.mxu1 %v3278_v45  ;;  %v658_v44 = vrot.slane %v653_v41, %v657_v39  ;;  %v666_v45 = vrot.slane %v653_v41, %v665_v40  ;;  %v3369_v39 = vld [vmem:[%s4208_s11 + $0x10] sm:$0xff]   ;;  %v3370_v40 = vld [vmem:[%s4208_s11 + $0x48] sm:$0xff]  }
  0x39   : > { %v670_v47 = vrot.slane %v653_v41, %v669_v43  ;;  %v3373_v43 = vld [vmem:[%s4208_s11] sm:$0xff]  }
  0x3b   : > { %1025 = vmatpush2.bf16.msra.mxu0 %v3280_v46  ;;  %1066 = vmatpush2.bf16.msra.mxu1 %v3281_v48  ;;  %v662_v46 = vrot.slane %v653_v41, %v661_v42  ;;  %v3371_v41 = vld [vmem:[%s4208_s11 + $0x8] sm:$0xff]   ;;  %v3372_v42 = vld [vmem:[%s4208_s11 + $0x40] sm:$0xff]  }
  0x3c   : > { %1026 = vmatprep.subr.bf16.mxu0 %v3282_v50  ;;  %1067 = vmatprep.subr.bf16.mxu1 %v3284_v51 }
  0x3f   : > { %1027 = vmatpush2.bf16.msra.mxu0 %v3286_v52  ;;  %1068 = vmatpush2.bf16.msra.mxu1 %v3287_v53 }
  0x40   : > { %1028 = vmatprep.subr.bf16.mxu0 %v3288_v54  ;;  %1069 = vmatprep.subr.bf16.mxu1 %v3290_v55 }
  0x43   : > { %1029 = vmatpush2.bf16.msra.mxu0 %v3292_v56  ;;  %1070 = vmatpush2.bf16.msra.mxu1 %v3293_v57 }
  0x44   : > { %1030 = vmatprep.subr.bf16.mxu0 %v3294_v58  ;;  %1071 = vmatprep.subr.bf16.mxu1 %v3296_v59 }
  0x47   : > { %1031 = vmatpush2.bf16.msra.mxu0 %v3298_v60  ;;  %1072 = vmatpush2.bf16.msra.mxu1 %v3299_v61  ;;  %v3870_v60 = vld [vmem:[%s582_s27] sm:$0xff] }
  0x48   : > { %1032 = vmatprep.subr.bf16.mxu0 %v3300_v62  ;;  %1073 = vmatprep.subr.bf16.mxu1 %v3302_v63 }
  0x4b   : > { %1033 = vmatpush2.bf16.msra.mxu0 %v3304_v0  ;;  %1074 = vmatpush2.bf16.msra.mxu1 %v3305_v1 }
  0x4c   : > { %2999 = vmatprep.subr.bf16.mxu1 %v3308_v2  ;;  %2977 = vmatprep.subr.bf16.mxu0 %v3309_v3 }
  0x4e   : > { %1035 = vmatmul.mubr.bf16.vlgmr.msra.gmra.mxu0 %v2777_v5  ;;  %1076 = vmatmul.mubr.bf16.vlgmr.msra.gmra.mxu1 %v2777_v5  ;;  %v2887_v5 = vcombine.high %v3870_v60, %v3870_v60 }
  0x4f   : > { %3000 = vmatpush3.bf16.msra.mxu1 %v3310_v4  ;;  %2978 = vmatpush3.bf16.msra.mxu0 %v3311_v6  ;;  %v3341_v4 = vld [vmem:[%s4207_s10 + $0x38] sm:$0xff]  }
  0x50   : > { %3001 = vmatprep.subr.bf16.mxu1 %v3312_v7  ;;  %2979 = vmatprep.subr.bf16.mxu0 %v3313_v8  ;;  %v3342_v7 = vld [vmem:[%s4207_s10 + $0x70] sm:$0xff]   ;;  %v3374_v8 = vld [vmem:[%s4204_s7 + $0x38] sm:$0xff]  }
  0x53   : > { %3002 = vmatpush3.bf16.msra.mxu1 %v3314_v9  ;;  %2980 = vmatpush3.bf16.msra.mxu0 %v3315_v10  ;;  %v3343_v9 = vld [vmem:[%s4207_s10 + $0x30] sm:$0xff]   ;;  %v3344_v10 = vld [vmem:[%s4207_s10 + $0x68] sm:$0xff]  }
  0x54   : > { %3003 = vmatprep.subr.bf16.mxu1 %v3316_v11  ;;  %2981 = vmatprep.subr.bf16.mxu0 %v3317_v12  ;;  %v3375_v11 = vld [vmem:[%s4204_s7 + $0x30] sm:$0xff]   ;;  %v3345_v12 = vld [vmem:[%s4207_s10 + $0x28] sm:$0xff]  }
  0x57   : > { %3004 = vmatpush3.bf16.msra.mxu1 %v3318_v13  ;;  %2982 = vmatpush3.bf16.msra.mxu0 %v3319_v14  ;;  %v3346_v13 = vld [vmem:[%s4207_s10 + $0x60] sm:$0xff]   ;;  %v3376_v14 = vld [vmem:[%s4204_s7 + $0x28] sm:$0xff]  }
  0x58   : > { %3005 = vmatprep.subr.bf16.mxu1 %v3320_v15  ;;  %2983 = vmatprep.subr.bf16.mxu0 %v3321_v16  ;;  %v3347_v15 = vld [vmem:[%s4207_s10 + $0x20] sm:$0xff]   ;;  %v3348_v16 = vld [vmem:[%s4207_s10 + $0x58] sm:$0xff]  }
  0x5b   : > { %3006 = vmatpush3.bf16.msra.mxu1 %v3322_v17  ;;  %2984 = vmatpush3.bf16.msra.mxu0 %v3323_v18  ;;  %v3377_v17 = vld [vmem:[%s4204_s7 + $0x20] sm:$0xff]   ;;  %v3349_v18 = vld [vmem:[%s4207_s10 + $0x18] sm:$0xff]  }
  0x5c   : > { %3007 = vmatprep.subr.bf16.mxu1 %v3324_v19  ;;  %2985 = vmatprep.subr.bf16.mxu0 %v3325_v20  ;;  %v3350_v19 = vld [vmem:[%s4207_s10 + $0x50] sm:$0xff]   ;;  %v3378_v20 = vld [vmem:[%s4204_s7 + $0x18] sm:$0xff]  }
  0x5f   : > { %3008 = vmatpush3.bf16.msra.mxu1 %v3326_v21  ;;  %2986 = vmatpush3.bf16.msra.mxu0 %v3327_v22  ;;  %v3351_v21 = vld [vmem:[%s4207_s10 + $0x10] sm:$0xff]   ;;  %v3352_v22 = vld [vmem:[%s4207_s10 + $0x48] sm:$0xff]  }
  0x60   : > { %3009 = vmatprep.subr.bf16.mxu1 %v3328_v23  ;;  %2987 = vmatprep.subr.bf16.mxu0 %v3329_v24  ;;  %v3353_v23 = vld [vmem:[%s4207_s10 + $0x8] sm:$0xff]   ;;  %v3354_v24 = vld [vmem:[%s4207_s10 + $0x40] sm:$0xff]  }
  0x63   : > { %3010 = vmatpush3.bf16.msra.mxu1 %v3330_v25  ;;  %2988 = vmatpush3.bf16.msra.mxu0 %v3331_v26  ;;  %v3355_v25 = vld [vmem:[%s4207_s10] sm:$0xff]   ;;  %v3358_v26 = vld [vmem:[%s4208_s11 + $0x78] sm:$0xff]  }
  0x64   : > { %3011 = vmatprep.subr.bf16.mxu1 %v3332_v27  ;;  %2989 = vmatprep.subr.bf16.mxu0 %v3333_v28  ;;  %v2886_v27 = vcombine.low %v3870_v60, %v3870_v60  ;;  %v3359_v28 = vld [vmem:[%s4208_s11 + $0x38] sm:$0xff]  }
  0x67   : > { %3012 = vmatpush3.bf16.msra.mxu1 %v3334_v29  ;;  %2990 = vmatpush3.bf16.msra.mxu0 %v3335_v30  ;;  %v3360_v29 = vld [vmem:[%s4208_s11 + $0x70] sm:$0xff]  }
  0x68   : > { %3013 = vmatprep.subr.bf16.mxu1 %v3336_v31  ;;  %2991 = vmatprep.subr.bf16.mxu0 %v3337_v32  ;;  %v3361_v30 = vld [vmem:[%s4208_s11 + $0x30] sm:$0xff]   ;;  %v3362_v31 = vld [vmem:[%s4208_s11 + $0x68] sm:$0xff]  }
  0x69   : > { %v3363_v32 = vld [vmem:[%s4208_s11 + $0x28] sm:$0xff]  }
  0x6b   : > { %3014 = vmatpush3.bf16.msra.mxu1 %v3338_v33  ;;  %2992 = vmatpush3.bf16.msra.mxu0 %v3339_v34  ;;  %v3364_v33 = vld [vmem:[%s4208_s11 + $0x60] sm:$0xff]  }
  0x6c   : > { %3030 = vmatprep.subr.bf16.mxu1 %v3340_v35  ;;  %3137 = vmatprep.subr.bf16.mxu0 %v3458_v36  ;;  %v3365_v34 = vld [vmem:[%s4208_s11 + $0x20] sm:$0xff]   ;;  %v3366_v35 = vld [vmem:[%s4208_s11 + $0x58] sm:$0xff]  }
 0x10e   : > { %v1036_v48 = vpop.f32.mrf.mxu0  ;;  %v1077_v49 = vpop.f32.mrf.mxu1 }
 0x10f   : > { %v1037_v50 = vadd.f32 %v1036_v48, %v658_v44  ;;  %v1078_v51 = vadd.f32 %v1077_v49, %v666_v45  ;;  %v3379_v44 = vld [vmem:[%s4204_s7 + $0x10] sm:$0xff]   ;;  %v3380_v45 = vld [vmem:[%s4204_s7 + $0x8] sm:$0xff]  }
 0x110   : > { %v1038_v52 = vpop.f32.mrf.mxu0  ;;  %v1079_v53 = vpop.f32.mrf.mxu1 }
 0x111   : > { %v1086_v54 = vmax.f32 %v1078_v51, 0.0  ;;  %v1039_v55 = vadd.f32 %v1038_v52, %v662_v46  ;;  %v1080_v56 = vadd.f32 %v1079_v53, %v670_v47  ;;  %v1084_v57 = vmax.f32 %v1037_v50, 0.0  ;;  %v3381_v46 = vld [vmem:[%s4204_s7] sm:$0xff]   ;;  %v3382_v47 = vld [vmem:[%s4206_s9 + $0x78] sm:$0xff]  }
 0x112   : > { %v1040_v58 = vpop.f32.mrf.mxu0  ;;  %v1081_v59 = vpop.f32.mrf.mxu1  ;;  %v2843_v50 = vld [vmem:[%s4203_s6] ss:$0 sm:$0xff] }
 0x113   : > { %v1085_v61 = vmax.f32 %v1039_v55, 0.0  ;;  %v1087_v62 = vmax.f32 %v1080_v56, 0.0  ;;  %v3872_v63 = vpack.c.bf16 %v1086_v54, %v1086_v54  ;;  %v3881_v6 = vpack.c.bf16 %v1084_v57, %v1084_v57 }
 0x114   : > { %v1041_v0 = vpop.f32.mrf.mxu0  ;;  %v1082_v1 = vpop.f32.mrf.mxu1 }
 0x115   : > { %v1089_v2 = vpack.c.bf16 %v1085_v61, %v1085_v61  ;;  %v3874_v3 = vpack.c.bf16 %v1087_v62, %v1087_v62  ;;  %v1554_v61 = vld [vmem:[%s577_s19] sm:$0xff]  ;;  %v3383_v0 = vld [vmem:[%s4206_s9 + $0x38] sm:$0xff]  }
 0x116   : > { %v2905_v1 = vcombine.high %v1554_v61, %v1554_v61 }
 0x117   : > { %1387 = vmatprep.mubr.bf16.mxu0 %v1089_v2  ;;  %1427 = vmatprep.mubr.bf16.mxu1 %v3874_v3 }
 0x118   : > { %1388 = vmatmul.mubr.bf16.vlgmr.msra.gmra.mxu0 %v3881_v6  ;;  %1428 = vmatmul.mubr.bf16.vlgmr.msra.gmra.mxu1 %v3872_v63 }
 0x119   : > { %3031 = vmatpush3.bf16.msra.mxu1 %v3341_v4  ;;  %1755 = vmatprep.mubr.bf16.mxu1 %v2887_v5  ;;  %v3384_v4 = vld [vmem:[%s4206_s9 + $0x70] sm:$0xff]  }
 0x11a   : > { %3032 = vmatprep.subr.bf16.mxu1 %v3342_v7  ;;  %3138 = vmatpush3.bf16.msra.mxu0 %v3374_v8  ;;  %v3385_v5 = vld [vmem:[%s4206_s9 + $0x30] sm:$0xff]   ;;  %v3387_v7 = vld [vmem:[%s4206_s9 + $0x28] sm:$0xff]   ;;  %v3388_v8 = vld [vmem:[%s4206_s9 + $0x60] sm:$0xff]  }
 0x11b   : > { %3139 = vmatprep.subr.bf16.mxu0 %v3458_v36  ;;  %3153 = vmatprep.mubr.msk.bf16.mxu0 %vm3459_vm0, %v3458_v36 }
 0x11d   : > { %3033 = vmatpush3.bf16.msra.mxu1 %v3343_v9  ;;  %v3389_v9 = vld [vmem:[%s4206_s9 + $0x20] sm:$0xff]  }
 0x11e   : > { %3034 = vmatprep.subr.bf16.mxu1 %v3344_v10  ;;  %3140 = vmatpush3.bf16.msra.mxu0 %v3375_v11  ;;  %v3390_v10 = vld [vmem:[%s4206_s9 + $0x58] sm:$0xff]  }
 0x11f   : > { %3141 = vmatprep.subr.bf16.mxu0 %v3458_v36  ;;  %v3391_v11 = vld [vmem:[%s4206_s9 + $0x18] sm:$0xff]  }
 0x121   : > { %3035 = vmatpush3.bf16.msra.mxu1 %v3345_v12  ;;  %v3392_v12 = vld [vmem:[%s4206_s9 + $0x50] sm:$0xff]  }
 0x122   : > { %3036 = vmatprep.subr.bf16.mxu1 %v3346_v13  ;;  %3142 = vmatpush3.bf16.msra.mxu0 %v3376_v14  ;;  %v3393_v13 = vld [vmem:[%s4206_s9 + $0x10] sm:$0xff]   ;;  %v3394_v14 = vld [vmem:[%s4206_s9 + $0x48] sm:$0xff]  }
 0x123   : > { %3143 = vmatprep.subr.bf16.mxu0 %v3458_v36 }
 0x125   : > { %3037 = vmatpush3.bf16.msra.mxu1 %v3347_v15 }
 0x126   : > { %3038 = vmatprep.subr.bf16.mxu1 %v3348_v16  ;;  %3144 = vmatpush3.bf16.msra.mxu0 %v3377_v17  ;;  %v3395_v16 = vld [vmem:[%s4206_s9 + $0x8] sm:$0xff]  }
 0x127   : > { %3145 = vmatprep.subr.bf16.mxu0 %v3458_v36 }
 0x129   : > { %3039 = vmatpush3.bf16.msra.mxu1 %v3349_v18  ;;  %v3396_v18 = vld [vmem:[%s4206_s9 + $0x40] sm:$0xff]  }
 0x12a   : > { %3040 = vmatprep.subr.bf16.mxu1 %v3350_v19  ;;  %3146 = vmatpush3.bf16.msra.mxu0 %v3378_v20 }
 0x12b   : > { %3147 = vmatprep.subr.bf16.mxu0 %v3458_v36 }
 0x12d   : > { %3041 = vmatpush3.bf16.msra.mxu1 %v3351_v21  ;;  %v3397_v21 = vld [vmem:[%s4206_s9] sm:$0xff]  }
 0x12e   : > { %3042 = vmatprep.subr.bf16.mxu1 %v3352_v22  ;;  %3148 = vmatpush3.bf16.msra.mxu0 %v3379_v44  ;;  %v3415_v44 = vld [vmem:[%s4208_s11 + $0x80] sm:$0xff]  }
 0x12f   : > { %3149 = vmatprep.subr.bf16.mxu0 %v3458_v36 }
 0x131   : > { %3043 = vmatpush3.bf16.msra.mxu1 %v3353_v23  ;;  %v3400_v23 = vld [vmem:[%s4208_s11 + $0xf8] sm:$0xff]  }
 0x132   : > { %3044 = vmatprep.subr.bf16.mxu1 %v3354_v24  ;;  %3150 = vmatpush3.bf16.msra.mxu0 %v3380_v45  ;;  %v2904_v24 = vcombine.low %v1554_v61, %v1554_v61  ;;  %v3416_v45 = vld [vmem:[%s4210_s13 + $0x38] sm:$0xff]  }
 0x133   : > { %3151 = vmatprep.subr.bf16.mxu0 %v3458_v36 }
 0x135   : > { %3045 = vmatpush3.bf16.msra.mxu1 %v3355_v25  ;;  %v3401_v25 = vld [vmem:[%s4208_s11 + $0xb8] sm:$0xff]  }
 0x136   : > { %3074 = vmatprep.subr.bf16.mxu1 %v3358_v26  ;;  %3152 = vmatpush3.bf16.msra.mxu0 %v3381_v46  ;;  %v3402_v26 = vld [vmem:[%s4208_s11 + $0xf0] sm:$0xff]  }
 0x137   : > { %3052 = vmatprep.subr.bf16.mxu0 %v3382_v47  ;;  %v3417_v46 = vld [vmem:[%s4210_s13 + $0x30] sm:$0xff]   ;;  %v3418_v47 = vld [vmem:[%s4210_s13 + $0x28] sm:$0xff]  }
 0x138   : > { %1756 = vmatmul.mubr.bf16.vlgmr.msra.gmra.mxu1 %v2886_v27  ;;  %v3403_v27 = vld [vmem:[%s4208_s11 + $0xb0] sm:$0xff]  }
 0x139   : > { %3075 = vmatpush3.bf16.msra.mxu1 %v3359_v28  ;;  %2194 = vmatprep.mubr.bf16.mxu1 %v1089_v2  ;;  %v3404_v28 = vld [vmem:[%s4208_s11 + $0xe8] sm:$0xff]  }
 0x13a   : > { %3076 = vmatprep.subr.bf16.mxu1 %v3360_v29  ;;  %v3405_v29 = vld [vmem:[%s4208_s11 + $0xa8] sm:$0xff]  }
 0x13d   : > { %3077 = vmatpush3.bf16.msra.mxu1 %v3361_v30  ;;  %v3406_v30 = vld [vmem:[%s4208_s11 + $0xe0] sm:$0xff]  }
 0x13e   : > { %3078 = vmatprep.subr.bf16.mxu1 %v3362_v31  ;;  %v3408_v31 = vld [vmem:[%s4208_s11 + $0xd8] sm:$0xff]  }
 0x141   : > { %3079 = vmatpush3.bf16.msra.mxu1 %v3363_v32  ;;  %v3409_v32 = vld [vmem:[%s4208_s11 + $0x98] sm:$0xff]  }
 0x142   : > { %3080 = vmatprep.subr.bf16.mxu1 %v3364_v33  ;;  %v3410_v33 = vld [vmem:[%s4208_s11 + $0xd0] sm:$0xff]  }
 0x145   : > { %3081 = vmatpush3.bf16.msra.mxu1 %v3365_v34  ;;  %v3411_v34 = vld [vmem:[%s4208_s11 + $0x90] sm:$0xff]  }
 0x146   : > { %3082 = vmatprep.subr.bf16.mxu1 %v3366_v35  ;;  %v3412_v35 = vld [vmem:[%s4208_s11 + $0xc8] sm:$0xff]  }
 0x149   : > { %3083 = vmatpush3.bf16.msra.mxu1 %v3367_v37 }
 0x14a   : > { %3084 = vmatprep.subr.bf16.mxu1 %v3368_v38 }
 0x14d   : > { %3085 = vmatpush3.bf16.msra.mxu1 %v3369_v39  ;;  %v3413_v39 = vld [vmem:[%s4208_s11 + $0x88] sm:$0xff]  }
 0x14e   : > { %3086 = vmatprep.subr.bf16.mxu1 %v3370_v40 }
 0x151   : > { %3087 = vmatpush3.bf16.msra.mxu1 %v3371_v41  ;;  %v3414_v41 = vld [vmem:[%s4208_s11 + $0xc0] sm:$0xff]  }
 0x152   : > { %3088 = vmatprep.subr.bf16.mxu1 %v3372_v42 }
 0x155   : > { %3089 = vmatpush3.bf16.msra.mxu1 %v3373_v43 }
 0x156   : > { %3157 = vmatprep.subr.bf16.mxu1 %v3458_v36 }
 0x158   : > { %2195 = vmatmul.mubr.bf16.vlgmr.msra.gmra.mxu1 %v3881_v6  ;;  %v3386_v6 = vld [vmem:[%s4206_s9 + $0x68] sm:$0xff]  }
 0x159   : > { %3173 = vmatprep.mubr.msk.bf16.mxu1 %vm3459_vm0, %v3458_v36  ;;  %3158 = vmatpush3.bf16.msra.mxu1 %v3416_v45 }
 0x15a   : > { %3159 = vmatprep.subr.bf16.mxu1 %v3458_v36 }
 0x15d   : > { %3160 = vmatpush3.bf16.msra.mxu1 %v3417_v46 }
 0x15e   : > { %3161 = vmatprep.subr.bf16.mxu1 %v3458_v36 }
 0x161   : > { %3162 = vmatpush3.bf16.msra.mxu1 %v3418_v47 }
 0x162   : > { %3163 = vmatprep.subr.bf16.mxu1 %v3458_v36 }
 0x1d8   : > { %v2993_v48 = vpop.f32.mrf.mxu0  ;;  %v3015_v49 = vpop.f32.mrf.mxu1 }
 0x1da   : > { %v2994_v51 = vpop.f32.mrf.mxu0  ;;  %v3016_v52 = vpop.f32.mrf.mxu1 }
 0x1db   : > { %v2995_v53 = vadd.f32 %v2994_v51, %v2993_v48  ;;  %v3017_v57 = vadd.f32 %v3016_v52, %v3015_v49  ;;  %v3420_v48 = vld [vmem:[%s4210_s13 + $0x18] sm:$0xff]   ;;  %v3421_v49 = vld [vmem:[%s4210_s13 + $0x10] sm:$0xff]   ;;  %v3423_v51 = vld [vmem:[%s4210_s13] sm:$0xff]  }
 0x1dc   : > { %v2996_v54 = vpop.f32.mrf.mxu0  ;;  %v3018_v55 = vpop.f32.mrf.mxu1  ;;  %v2876_v52 = vld [vmem:[%s4205_s8] ss:$0 sm:$0xff] }
 0x1dd   : > { %v1390_v56 = vadd.f32 %v2995_v53, %v2843_v50  ;;  %v3422_v50 = vld [vmem:[%s4210_s13 + $0x8] sm:$0xff]  }
 0x1de   : > { %v2997_v58 = vpop.f32.mrf.mxu0  ;;  %v3019_v59 = vpop.f32.mrf.mxu1 }
 0x1df   : > { %v1430_v60 = vadd.f32 %v3017_v57, %v1390_v56 }
 0x1e1   : > { %v1435_v62 = vmax.f32 %v1430_v60, 0.0 }
 0x1e3   : > { %v1436_v2 = vpack.c.bf16 %v1435_v62, %v1435_v62 }
 0x1e5   : > { %3154 = vmatmul.mubr.bf16.vlgmr.msra.gmra.mxu0 %v1436_v2 }
 0x1e6   : > { %3053 = vmatpush3.bf16.msra.mxu0 %v3383_v0  ;;  %1898 = vmatprep.mubr.bf16.mxu0 %v2905_v1 }
 0x1e7   : > { %3054 = vmatprep.subr.bf16.mxu0 %v3384_v4 }
 0x1ea   : > { %3055 = vmatpush3.bf16.msra.mxu0 %v3385_v5 }
 0x1eb   : > { %3056 = vmatprep.subr.bf16.mxu0 %v3386_v6 }
 0x1ee   : > { %3057 = vmatpush3.bf16.msra.mxu0 %v3387_v7 }
 0x1ef   : > { %3058 = vmatprep.subr.bf16.mxu0 %v3388_v8 }
 0x1f2   : > { %3059 = vmatpush3.bf16.msra.mxu0 %v3389_v9 }
 0x1f3   : > { %3060 = vmatprep.subr.bf16.mxu0 %v3390_v10 }
 0x1f6   : > { %3061 = vmatpush3.bf16.msra.mxu0 %v3391_v11  ;;  %v2954_v11 = vld [vmem:[%s4209_s12] ss:$0 sm:$0xff] }
 0x1f7   : > { %3062 = vmatprep.subr.bf16.mxu0 %v3392_v12 }
 0x1f8   : > { %v3046_v15 = vpop.f32.mrf.mxu1 }
 0x1fa   : > { %3063 = vmatpush3.bf16.msra.mxu0 %v3393_v13  ;;  %v3047_v17 = vpop.f32.mrf.mxu1 }
 0x1fb   : > { %3064 = vmatprep.subr.bf16.mxu0 %v3394_v14  ;;  %v4067_v19 = vadd.f32 %v3047_v17, %v3046_v15  ;;  %v2955_v17 = vld [vmem:[%s4211_s14] ss:$0 sm:$0xff] }
 0x1fc   : > { %v3049_v20 = vpop.f32.mrf.mxu1 }
 0x1fe   : > { %3065 = vmatpush3.bf16.msra.mxu0 %v3395_v16  ;;  %v3050_v22 = vpop.f32.mrf.mxu1 }
 0x1ff   : > { %3066 = vmatprep.subr.bf16.mxu0 %v3396_v18 }
 0x202   : > { %3067 = vmatpush3.bf16.msra.mxu0 %v3397_v21 }
 0x203   : > { %3096 = vmatprep.subr.bf16.mxu0 %v3400_v23 }
 0x205   : > { %1899 = vmatmul.mubr.bf16.vlgmr.msra.gmra.mxu0 %v2904_v24 }
 0x206   : > { %3097 = vmatpush3.bf16.msra.mxu0 %v3401_v25  ;;  %2234 = vmatprep.mubr.bf16.mxu0 %v3874_v3  ;;  %v3407_v3 = vld [vmem:[%s4208_s11 + $0xa0] sm:$0xff]  }
 0x207   : > { %3098 = vmatprep.subr.bf16.mxu0 %v3402_v26 }
 0x20a   : > { %3099 = vmatpush3.bf16.msra.mxu0 %v3403_v27 }
 0x20b   : > { %3100 = vmatprep.subr.bf16.mxu0 %v3404_v28 }
 0x20e   : > { %3101 = vmatpush3.bf16.msra.mxu0 %v3405_v29 }
 0x20f   : > { %3102 = vmatprep.subr.bf16.mxu0 %v3406_v30 }
 0x212   : > { %3103 = vmatpush3.bf16.msra.mxu0 %v3407_v3 }
 0x213   : > { %3104 = vmatprep.subr.bf16.mxu0 %v3408_v31 }
 0x216   : > { %3105 = vmatpush3.bf16.msra.mxu0 %v3409_v32 }
 0x217   : > { %3106 = vmatprep.subr.bf16.mxu0 %v3410_v33 }
 0x218   : > { %v3090_v37 = vpop.f32.mrf.mxu1 }
 0x21a   : > { %v3091_v38 = vpop.f32.mrf.mxu1  ;;  %3107 = vmatpush3.bf16.msra.mxu0 %v3411_v34 }
 0x21b   : > { %v3092_v40 = vadd.f32 %v3091_v38, %v3090_v37  ;;  %3108 = vmatprep.subr.bf16.mxu0 %v3412_v35 }
 0x21c   : > { %v3093_v42 = vpop.f32.mrf.mxu1 }
 0x21e   : > { %v3094_v43 = vpop.f32.mrf.mxu1  ;;  %3109 = vmatpush3.bf16.msra.mxu0 %v3413_v39 }
 0x21f   : > { %3110 = vmatprep.subr.bf16.mxu0 %v3414_v41 }
 0x222   : > { %3111 = vmatpush3.bf16.msra.mxu0 %v3415_v44 }
 0x225   : > { %2235 = vmatmul.mubr.bf16.vlgmr.msra.gmra.mxu0 %v3872_v63  ;;  %v3419_v63 = vld [vmem:[%s4210_s13 + $0x20] sm:$0xff]  }
 0x226   : > { %3164 = vmatpush3.bf16.msra.mxu1 %v3419_v63 }
 0x227   : > { %3165 = vmatprep.subr.bf16.mxu1 %v3458_v36 }
 0x22a   : > { %3166 = vmatpush3.bf16.msra.mxu1 %v3420_v48 }
 0x22b   : > { %3167 = vmatprep.subr.bf16.mxu1 %v3458_v36 }
 0x22e   : > { %3168 = vmatpush3.bf16.msra.mxu1 %v3421_v49 }
 0x22f   : > { %3169 = vmatprep.subr.bf16.mxu1 %v3458_v36 }
 0x232   : > { %3170 = vmatpush3.bf16.msra.mxu1 %v3422_v50 }
 0x233   : > { %3171 = vmatprep.subr.bf16.mxu1 %v3458_v36 }
 0x236   : > { %3172 = vmatpush3.bf16.msra.mxu1 %v3423_v51 }
 0x237   : > { %3185 = vmatprep.subr.mxu1 %v3458_v36 }
 0x2a5   : > { %v1542_v53 = vpop.f32.mrf.mxu0 }
 0x2a6   : > { %v1543_v54 = vadd.f32 %v2876_v52, %v1542_v53 }
 0x2a7   : > { %v3155_v55 = vpop.f32.mrf.mxu0 }
 0x2a8   : > { %v2885_v56 = vmul.f32 -1.442695, %v1543_v54 }
 0x2a9   : > { %v1545_v57 = vpop.f32.mrf.mxu0 }
 0x2aa   : > { %3424 = vpow2.f32 %v2885_v56 }
 0x2ab   : > { %v3156_v58 = vpop.f32.mrf.mxu0 }
 0x2b7   : > { %v3425_v59 = vpop.eup %3424 }
 0x2b8   : > { %v1551_v60 = vadd.f32 1.0, %v3425_v59 }
 0x2ba   : > { %3426 = vrcp.f32 %v1551_v60 }
 0x2c5   : > { %v3068_v61 = vpop.f32.mrf.mxu0 }
 0x2c7   : > { %v3427_v62 = vpop.eup %3426  ;;  %v3069_v0 = vpop.f32.mrf.mxu0 }
 0x2c8   : > { %3177 = vmatprep.subr.mxu0 %v3427_v62  ;;  %v3070_v5 = vadd.f32 %v3069_v0, %v3068_v61 }
 0x2c9   : > { %v3071_v1 = vpop.f32.mrf.mxu0  ;;  %3178 = vmatpush3.msra.mxu0 %v3427_v62 }
 0x2ca   : > { %v1901_v9 = vadd.f32 %v3070_v5, %v4067_v19  ;;  %v2537_v5 = vld [vmem:[%s4212_s15 + $0x18] sm:$0x3f] }
 0x2cb   : > { %v3072_v2 = vpop.f32.mrf.mxu0 }
 0x2e5   : > { %v3112_v4 = vpop.f32.mrf.mxu0 }
 0x2e7   : > { %v3113_v6 = vpop.f32.mrf.mxu0 }
 0x2e8   : > { %v3114_v7 = vadd.f32 %v3113_v6, %v3112_v4 }
 0x2e9   : > { %v3115_v8 = vpop.f32.mrf.mxu0 }
 0x2ea   : > { %v2237_v10 = vadd.f32 %v3114_v7, %v3092_v40 }
 0x2eb   : > { %v3116_v12 = vpop.f32.mrf.mxu0 }
 0x2ec   : > { %v2242_v13 = vadd.f32 %v2237_v10, %v1901_v9  ;;  %v2535_v9 = vld [vmem:[%s4212_s15 + $0x8] sm:$0xff] }
 0x2ee   : > { %v2250_v14 = vadd.f32 %v2954_v11, %v2242_v13  ;;  %v2536_v11 = vld [vmem:[%s4212_s15 + $0x10] sm:$0xff]  ;;  %v2534_v13 = vld [vmem:[%s4212_s15] sm:$0xff] }
 0x2f0   : > { %v2251_v15 = vmax.f32 %v2250_v14, 0.0 }
 0x2f2   : > { %v2252_v16 = vpack.c.bf16 %v2251_v15, %v2251_v15 }
 0x2f4   : > { %3174 = vmatmul.mubr.bf16.vlgmr.msra.gmra.mxu1 %v2252_v16 }
 0x2f5   : > { %3193 = vmatprep.mubr.msk.f32.mxu1 %vm3459_vm0, %v3458_v36 }
 0x3b4   : > { %v2358_v18 = vpop.f32.mrf.mxu1 }
 0x3b5   : > { %v2359_v19 = vadd.f32 %v2955_v17, %v2358_v18 }
 0x3b6   : > { %v3175_v20 = vpop.f32.mrf.mxu1 }
 0x3b7   : > { %v2364_v21 = vmax.f32 %v2359_v19, 0.0 }
 0x3b8   : > { %v2361_v22 = vpop.f32.mrf.mxu1 }
 0x3b9   : > { %v2366_v23 = vsel %vm2365_vm1, %v2364_v21, inf }
 0x3ba   : > { %2367 = vmin.xlane.f32.xlu0 %v2366_v23  ;;  %v3176_v24 = vpop.f32.mrf.mxu1 }
 0x443   : > { %v2368_v25 = vpop.xlane.xlu0 %2367 }
 0x444   : > { %v2369_v26 = vrot.slane %v2368_v25, 4 }
 0x446   : > { %v2370_v27 = vmin.f32 %v2368_v25, %v2369_v26 }
 0x448   : > { %v2371_v28 = vrot.slane %v2370_v27, 2 }
 0x44a   : > { %v2372_v29 = vmin.f32 %v2370_v27, %v2371_v28 }
 0x44c   : > { %v2373_v30 = vrot.slane %v2372_v29, 1 }
 0x44e   : > { %v2374_v3 = vmin.f32 %v2372_v29, %v2373_v30 }
 0x450   : > { %3196 = vpush %v2374_v3 }
 0x481   : > { %s3197_s26 = spop %3196 }
 0x482   : > { %v2376_v31 = vstv %s3197_s26 }
 0x483   : > { %v2377_v32 = vsub.f32 %v2364_v21, %v2376_v31 }
 0x485   : > { %v2378_v33 = vsel %vm2365_vm1, %v2377_v32, -inf }
 0x486   : > { %2379 = vmax.xlane.f32.xlu0 %v2378_v33 }
 0x50f   : > { %v2380_v34 = vpop.xlane.xlu0 %2379 }
 0x510   : > { %v2381_v35 = vrot.slane %v2380_v34, 4 }
 0x512   : > { %v2382_v37 = vmax.f32 %v2380_v34, %v2381_v35 }
 0x514   : > { %v2383_v38 = vrot.slane %v2382_v37, 2 }
 0x516   : > { %v2384_v39 = vmax.f32 %v2382_v37, %v2383_v38 }
 0x518   : > { %v2385_v40 = vrot.slane %v2384_v39, 1 }
 0x51a   : > { %v2386_v41 = vmax.f32 %v2384_v39, %v2385_v40 }
 0x51c   : > { %3198 = vpush %v2386_v41 }
 0x54d   : > { %s3199_s28 = spop %3198 }
 0x54e   : > { %v2388_v42 = vstv %s3199_s28 }
 0x54f   : > { %v2389_v43 = vmax.f32 %v2388_v42, 0.0001 }
 0x551   : > { %3428 = vrcp.f32 %v2389_v43 }
 0x55e   : > { %v3429_v44 = vpop.eup %3428 }
 0x55f   : > { %v2391_v45 = vmul.f32 %v3429_v44, %v2377_v32 }
 0x561   : > { %v2964_v46 = vadd.f32 -0.5, %v2391_v45 }
 0x563   : > { %v2965_v47 = vmul.f32 -10.0, %v2964_v46 }
 0x565   : > { %v2395_v63 = vmul.f32 1.442695, %v2965_v47 }
 0x567   : > { %3430 = vpow2.f32 %v2395_v63 }
 0x574   : > { %v3431_v48 = vpop.eup %3430 }
 0x575   : > { %v2397_v49 = vadd.f32 1.0, %v3431_v48 }
 0x577   : > { %3432 = vrcp.f32 %v2397_v49 }
 0x584   : > { %v3433_v50 = vpop.eup %3432 }
 0x585   : > { %2400 = vxpose.xlu1.b32.start.end [1/1] (short) (narrow) %v3433_v50, 32 }
 0x601   : > { %v2416_v51 = vpop.trf.xlu1 }
 0x602   : > { %3179 = vmatprep.mubr.msk.f32.mxu0 %vm2432_vm2, %v2416_v51 }
 0x605   : > { %v2417_v52 = vpop.trf.xlu1 }
 0x606   : > { %3180 = vmatmul.mubr.msk.f32.vlgmr.msra.gmra.mxu0 %vm2432_vm2, %v2417_v52 }
 0x609   : > { %v2418_v53 = vpop.trf.xlu1 }
 0x60a   : > { %3182 = vmatprep.mubr.msk.f32.mxu0 %vm2432_vm2, %v2418_v53 }
 0x60d   : > { %v2419_v54 = vpop.trf.xlu1 }
 0x60e   : > { %3183 = vmatmul.mubr.msk.f32.gmra.mxu0 %vm2432_vm2, %v2419_v54 }
 0x6c6   : > { %v3181_v55 = vpop.f32.mrf.mxu0 }
 0x6c7   : > { %v2531_v56 = vmul.f32 0.125, %v3181_v55 }
 0x6c8   : > { %v2511_v58 = vpop.f32.mrf.mxu0 }
 0x6c9   : > { %v2553_v57 = vmul.f32 %v2531_v56, %v2531_v56  ;;  %v2530_v1 = vmul.f32 0.125, %v2511_v58  ;;  %v2539_v10 = vmul.f32 %v2535_v9, %v2531_v56  ;;  %v2609_v58 = vld [vmem:[%s4213_s16] sm:$0x3] }
 0x6cb   : > { %2558 = vadd.xlane.f32.xlu0 %v2553_v57  ;;  %v2552_v6 = vmul.f32 %v2530_v1, %v2530_v1  ;;  %v2538_v14 = vmul.f32 %v2534_v13, %v2530_v1 }
 0x6ce   : > { %v3184_v59 = vpop.f32.mrf.mxu0 }
 0x6cf   : > { %v2533_v60 = vmul.f32 0.125, %v3184_v59 }
 0x6d0   : > { %v2521_v61 = vpop.f32.mrf.mxu0 }
 0x6d1   : > { %v2532_v62 = vmul.f32 0.125, %v2521_v61  ;;  %v2555_v0 = vmul.f32 %v2533_v60, %v2533_v60  ;;  %v2541_v7 = vmul.f32 %v2537_v5, %v2533_v60 }
 0x6d3   : > { %v2562_v2 = vsel %vm2548_vm3, %v2555_v0, 0.0  ;;  %v2554_v4 = vmul.f32 %v2532_v62, %v2532_v62  ;;  %v2549_v8 = vsel %vm2548_vm3, %v2541_v7, 0.0  ;;  %v2540_v12 = vmul.f32 %v2536_v11, %v2532_v62 }
 0x6d4   : > { %2563 = vadd.xlane.f32.xlu1 %v2562_v2 }
 0x6d5   : > { %2560 = vadd.xlane.f32.xlu0 %v2554_v4 }
 0x6d9   : > { %2556 = vadd.xlane.f32.xlu0 %v2552_v6 }
 0x6dd   : > { %2550 = vadd.xlane.f32.xlu0 %v2549_v8 }
 0x6e1   : > { %2544 = vadd.xlane.f32.xlu0 %v2539_v10 }
 0x6e5   : > { %2546 = vadd.xlane.f32.xlu0 %v2540_v12 }
 0x6e9   : > { %2542 = vadd.xlane.f32.xlu0 %v2538_v14 }
 0x754   : > { %v2559_v15 = vpop.xlane.xlu0 %2558 }
 0x755   : > { %3434 = vrsqrt.f32 %v2559_v15  ;;  %vm2574_vm4 = vcmp.eq.f32.partialorder %v2559_v15, inf  ;;  %v2577_v22 = vand.u32 2147483648, %v2559_v15  ;;  %vm2576_vm5 = vcmp.eq.f32.partialorder %v2559_v15, 0.0 }
 0x75d   : > { %v2564_v16 = vpop.xlane.xlu1 %2563 }
 0x75e   : > { %3436 = vrsqrt.f32 %v2564_v16  ;;  %v2561_v17 = vpop.xlane.xlu0 %2560  ;;  %vm2588_vm6 = vcmp.eq.f32.partialorder %v2564_v16, inf  ;;  %v2591_v28 = vand.u32 2147483648, %v2564_v16  ;;  %vm2590_vm7 = vcmp.eq.f32.partialorder %v2564_v16, 0.0 }
 0x75f   : > { %3438 = vrsqrt.f32 %v2561_v17  ;;  %vm2581_vm8 = vcmp.eq.f32.partialorder %v2561_v17, inf  ;;  %v2584_v3 = vand.u32 2147483648, %v2561_v17  ;;  %vm2583_vm9 = vcmp.eq.f32.partialorder %v2561_v17, 0.0 }
 0x762   : > { %v3435_v18 = vpop.eup %3434  ;;  %v2557_v19 = vpop.xlane.xlu0 %2556 }
 0x763   : > { %v2573_v20 = vmul.f32 %v3435_v18, %v2559_v15  ;;  %3440 = vrsqrt.f32 %v2557_v19  ;;  %vm2567_vm10 = vcmp.eq.f32.partialorder %v2557_v19, inf  ;;  %v2570_v39 = vand.u32 2147483648, %v2557_v19 }
 0x764   : > { %vm2569_vm11 = vcmp.eq.f32.partialorder %v2557_v19, 0.0 }
 0x765   : > { %v2575_v21 = vsel %vm2574_vm4, %v2559_v15, %v2573_v20 }
 0x766   : > { %v2578_v23 = vsel %vm2576_vm5, %v2577_v22, %v2575_v21  ;;  %v2551_v40 = vpop.xlane.xlu0 %2550 }
 0x767   : > { %v2594_v27 = vmax.f32 %v2578_v23, 1e-12 }
 0x769   : > { %3442 = vrcp.f32 %v2594_v27 }
 0x76a   : > { %v2545_v44 = vpop.xlane.xlu0 %2544 }
 0x76b   : > { %v3437_v24 = vpop.eup %3436 }
 0x76c   : > { %v3439_v25 = vpop.eup %3438  ;;  %v2587_v26 = vmul.f32 %v3437_v24, %v2564_v16 }
 0x76d   : > { %v2580_v29 = vmul.f32 %v3439_v25, %v2561_v17 }
 0x76e   : > { %v2589_v30 = vsel %vm2588_vm6, %v2564_v16, %v2587_v26  ;;  %v2547_v46 = vpop.xlane.xlu0 %2546 }
 0x76f   : > { %v2592_v31 = vsel %vm2590_vm7, %v2591_v28, %v2589_v30  ;;  %v2582_v32 = vsel %vm2581_vm8, %v2561_v17, %v2580_v29 }
 0x770   : > { %v3441_v33 = vpop.eup %3440  ;;  %v2596_v34 = vmax.f32 %v2592_v31, 1e-12  ;;  %v2585_v35 = vsel %vm2583_vm9, %v2584_v3, %v2582_v32 }
 0x771   : > { %v2595_v37 = vmax.f32 %v2585_v35, 1e-12  ;;  %v2566_v38 = vmul.f32 %v3441_v33, %v2557_v19 }
 0x772   : > { %3444 = vrcp.f32 %v2596_v34  ;;  %v2543_v54 = vpop.xlane.xlu0 %2542 }
 0x773   : > { %v2568_v41 = vsel %vm2567_vm10, %v2557_v19, %v2566_v38  ;;  %3446 = vrcp.f32 %v2595_v37 }
 0x774   : > { %v2571_v42 = vsel %vm2569_vm11, %v2570_v39, %v2568_v41 }
 0x775   : > { %v2593_v43 = vmax.f32 %v2571_v42, 1e-12 }
 0x776   : > { %v3443_v45 = vpop.eup %3442 }
 0x777   : > { %3448 = vrcp.f32 %v2593_v43  ;;  %v2600_v51 = vmul.f32 %v3443_v45, %v2545_v44 }
 0x779   : > { %v2606_v56 = vmax.f32 %v2600_v51, 0.0 }
 0x77f   : > { %v3445_v47 = vpop.eup %3444 }
 0x780   : > { %v3447_v63 = vpop.eup %3446  ;;  %v2604_v48 = vmul.f32 %v3445_v47, %v2551_v40 }
 0x781   : > { %v2602_v49 = vmul.f32 %v3447_v63, %v2547_v46 }
 0x782   : > { %v2608_v50 = vmax.f32 %v2604_v48, 0.0 }
 0x783   : > { %v2607_v52 = vmax.f32 %v2602_v49, 0.0 }
 0x784   : > { %v3449_v53 = vpop.eup %3448  ;;  %3186 = vmatpush3.msk.msra.mxu1 %vm2548_vm3, %v2608_v50 }
 0x785   : > { %v2598_v55 = vmul.f32 %v3449_v53, %v2543_v54  ;;  %3187 = vmatprep.subr.mxu1 %v3458_v36 }
 0x786   : > { %3188 = vmatpush3.msra.mxu1 %v2607_v52 }
 0x787   : > { %v2605_v57 = vmax.f32 %v2598_v55, 0.0  ;;  %3189 = vmatprep.subr.mxu1 %v3458_v36 }
 0x788   : > { %3190 = vmatpush3.msra.mxu1 %v2606_v56 }
 0x789   : > { %3191 = vmatprep.subr.mxu1 %v3458_v36 }
 0x78a   : > { %3192 = vmatpush3.msra.mxu1 %v2605_v57 }
 0x78b   : > { %3194 = vmatmul.mubr.msk.f32.vlgmr.msra.gmra.mxu1 %vm2365_vm1, %v2609_v58 }
 0x84b   : > { %v2682_v59 = vpop.f32.mrf.mxu1 }
 0x84c   : > { %2687 = vst.msk [vmem:[%s586_s29] sm:$0x3] %vm2686_vm12, %v2682_v59 }
 0x84d   : > { %v3195_v60 = vpop.f32.mrf.mxu1 }
 0x84e PF: > { %s27_s24 = sadd.s32 1, %s3456_s24  }
 0x84f   : > { %p24_p4 = scmp.ge.s32.totalorder %s27_s24, 4  }
 0x851   :  { %26 = sbr.rel (!%p24_p4) target bundleno = 3 (0x3), region = 124 }

</bundles_post_ra>
